<compile_context>
chip_gen: v6e
topology: v6e:2x2x1
jax: 0.10.0
libtpu: 0.0.40
codegen_flags: <defaults>
</compile_context>

<pallas_src>
import jax
import jax.numpy as jnp
from jax.experimental import pallas as pl
from jax.experimental.pallas import tpu as pltpu

# ---- static problem config ------------------------------------------------
N, C, H, W = 2, 4, 16, 16          # batch, channels (in == out), spatial
K = 3                              # conv kernel size, padding = 1, stride = 1
NC, HW = N * C, H * W              # 8 rows (sublanes), 256 columns (lanes)
EPS = 1e-5                         # InstanceNorm eps (PyTorch default)
NEG_SLOPE = 0.01                   # LeakyReLU negative slope
_HIGHEST = jax.lax.Precision.HIGHEST


def _flat_shift(src, s):
    """t[:, f] = src[:, f + s] if 0 <= f + s < HW else 0   (s is static)."""
    if s == 0:
        return src
    zeros = jnp.zeros((NC, abs(s)), jnp.float32)
    if s > 0:
        return jnp.concatenate([src[:, s:], zeros], axis=1)
    return jnp.concatenate([zeros, src[:, :s]], axis=1)


def resblock_kernel(x_ref, w1_ref, g1_ref, b1_ref, w2_ref, g2_ref, b2_ref,
                    o_ref):
    """Whole batch in one step.

    x_ref  : VMEM (N*C, H*W)       input slab (row n*C + c, flat index h*W + w)
    w*_ref : VMEM (K*K, N*C, N*C)  per-tap block-diagonal conv weights
    g*/b*  : VMEM (N*C, 1)         instance-norm affine params (per row)
    o_ref  : VMEM (N*C, H*W)       output slab
    """
    x = x_ref[...]                                          # (8, 256) f32

    # lane-position masks for the W-edge taps (the H edges are already zeroed
    # by the zero-filled flat shift).
    wpos = jax.lax.broadcasted_iota(jnp.int32, (NC, HW), 1) % W
    mask_w = {-1: wpos >= 1, 1: wpos <= W - 2}

    def conv(src, w_ref):
        acc = jnp.zeros((NC, HW), jnp.float32)
        for kh in range(K):
            for kw in range(K):
                dh, dw = kh - 1, kw - 1
                tap = _flat_shift(src, dh * W + dw)
                if dw != 0:
                    tap = jnp.where(mask_w[dw], tap, 0.0)
                acc = acc + jnp.dot(w_ref[kh * K + kw], tap,
                                    preferred_element_type=jnp.float32,
                                    precision=_HIGHEST)
        return acc

    def inorm(v, g_ref, b_ref):
        mu = jnp.mean(v, axis=1, keepdims=True)             # (NC, 1)
        var = jnp.mean((v - mu) ** 2, axis=1, keepdims=True)  # biased, 2-pass
        return (v - mu) * jax.lax.rsqrt(var + EPS) * g_ref[...] + b_ref[...]

    def lrelu(v):
        return jnp.where(v > 0, v, NEG_SLOPE * v)

    act1 = lrelu(inorm(conv(x, w1_ref), g1_ref, b1_ref))
    out = inorm(conv(act1, w2_ref), g2_ref, b2_ref) + x     # residual add
    o_ref[...] = lrelu(out)


# ---- wrapper-side parameter / layout plumbing ------------------------------
def _blockdiag_taps(w):
    """(C_out, C_in, K, K) OIHW -> (K*K, N*C, N*C) per-tap block-diag weights."""
    w_t = jnp.transpose(w, (2, 3, 0, 1)).reshape(K * K, C, C)   # (9, Cout, Cin)
    eye = jnp.eye(N, dtype=w.dtype)
    return jnp.einsum('ab,tij->taibj', eye, w_t).reshape(K * K, NC, NC)


def _per_row(p):
    """(C,) per-channel param -> (N*C, 1) per-row param."""
    return jnp.tile(p, (N,)).reshape(NC, 1)


def unet_res_block(x, w1, g1, b1, w2, g2, b2):
    """x: (N, C, H, W) f32; conv weights OIHW; returns (N, C, H, W) f32."""
    n, c, h, w = x.shape
    assert (n, c, h, w) == (N, C, H, W)
    x2d = x.reshape(NC, HW)                                 # lane-dense slab

    vmem = [pl.BlockSpec(memory_space=pltpu.MemorySpace.VMEM) for _ in range(7)]
    out2d = pl.pallas_call(
        resblock_kernel,
        out_shape=jax.ShapeDtypeStruct((NC, HW), jnp.float32),
        in_specs=vmem,
        out_specs=pl.BlockSpec(memory_space=pltpu.MemorySpace.VMEM),
    )(x2d, _blockdiag_taps(w1), _per_row(g1), _per_row(b1),
      _blockdiag_taps(w2), _per_row(g2), _per_row(b2))

    return out2d.reshape(N, C, H, W)


# ---------------- pure-JAX reference (mirrors the PyTorch forward) ----------
def reference(x, w1, g1, b1, w2, g2, b2):
    def conv(v, wgt):
        return jax.lax.conv_general_dilated(
            v, wgt, window_strides=(1, 1), padding=((1, 1), (1, 1)),
            dimension_numbers=("NCHW", "OIHW", "NCHW"), precision=_HIGHEST)

    def inorm(v, g, b):
        mu = v.mean(axis=(2, 3), keepdims=True)
        var = ((v - mu) ** 2).mean(axis=(2, 3), keepdims=True)
        return ((v - mu) * jax.lax.rsqrt(var + EPS)
                * g[None, :, None, None] + b[None, :, None, None])

    def lrelu(v):
        return jnp.where(v > 0, v, NEG_SLOPE * v)

    out = lrelu(inorm(conv(x, w1), g1, b1))
    out = inorm(conv(out, w2), g2, b2) + x
    return lrelu(out)


if __name__ == "__main__":
    key = jax.random.PRNGKey(0)
    kx, k1, k2 = jax.random.split(key, 3)

    x = jax.random.normal(kx, (N, C, H, W), dtype=jnp.float32)

    # deterministic synthetic parameters (module __init__ shapes)
    w1 = 0.1 * jax.random.normal(k1, (C, C, K, K), dtype=jnp.float32)
    w2 = 0.1 * jax.random.normal(k2, (C, C, K, K), dtype=jnp.float32)
    g1 = 1.0 + 0.1 * jnp.arange(C, dtype=jnp.float32)
    b1 = 0.05 * jnp.arange(C, dtype=jnp.float32)
    g2 = 1.0 - 0.05 * jnp.arange(C, dtype=jnp.float32)
    b2 = -0.02 * jnp.arange(C, dtype=jnp.float32)

    run = jax.jit(unet_res_block)
    out = jax.block_until_ready(run(x, w1, g1, b1, w2, g2, b2))

    ref = reference(x, w1, g1, b1, w2, g2, b2)
    assert out.shape == (N, C, H, W) and out.dtype == jnp.float32
    max_err = jnp.max(jnp.abs(out - ref))
    assert jnp.allclose(out, ref, atol=1e-3, rtol=1e-3), f"max abs err {max_err}"

    print("KERNEL_OK")
</pallas_src>

<mosaic_0001>
module attributes {stable_mosaic.version = 11 : i64} {
  func.func @resblock_kernel(%arg0: memref<8x256xf32, #tpu.memory_space<vmem>>, %arg1: memref<9x8x8xf32, #tpu.memory_space<vmem>>, %arg2: memref<8x1xf32, #tpu.memory_space<vmem>>, %arg3: memref<8x1xf32, #tpu.memory_space<vmem>>, %arg4: memref<9x8x8xf32, #tpu.memory_space<vmem>>, %arg5: memref<8x1xf32, #tpu.memory_space<vmem>>, %arg6: memref<8x1xf32, #tpu.memory_space<vmem>>, %arg7: memref<8x256xf32, #tpu.memory_space<vmem>>) attributes {dimension_semantics = [], scalar_prefetch = 0 : i64, scratch_operands = 0 : i64, tpu.core_type = #tpu.core_type<tc>} {
    %c0 = arith.constant 0 : index
    %c0_0 = arith.constant 0 : index
    %0 = vector.load %arg0[%c0, %c0_0] : memref<8x256xf32, #tpu.memory_space<vmem>>, vector<8x256xf32>
    %1 = tpu.iota {dimensions = array<i32: 1>} : vector<8x256xi32>
    %c16_i32 = arith.constant 16 : i32
    %c0_i32 = arith.constant 0 : i32
    %2 = arith.cmpi eq, %c16_i32, %c0_i32 : i32
    %c1_i32 = arith.constant 1 : i32
    %3 = arith.select %2, %c1_i32, %c16_i32 : i32
    %4 = vector.broadcast %3 : i32 to vector<8x256xi32>
    %5 = arith.remsi %1, %4 : vector<8x256xi32>
    %c0_i32_1 = arith.constant 0 : i32
    %6 = vector.broadcast %c0_i32_1 : i32 to vector<8x256xi32>
    %7 = arith.cmpi ne, %5, %6 : vector<8x256xi32>
    %c0_i32_2 = arith.constant 0 : i32
    %8 = vector.broadcast %c0_i32_2 : i32 to vector<8x256xi32>
    %9 = arith.cmpi slt, %5, %8 : vector<8x256xi32>
    %c0_i32_3 = arith.constant 0 : i32
    %10 = arith.cmpi slt, %3, %c0_i32_3 : i32
    %11 = vector.broadcast %10 : i1 to vector<8x256xi1>
    %12 = vector.broadcast %11 : vector<8x256xi1> to vector<8x256xi1>
    %13 = arith.xori %9, %12 : vector<8x256xi1>
    %14 = arith.andi %13, %7 : vector<8x256xi1>
    %15 = vector.broadcast %3 : i32 to vector<8x256xi32>
    %16 = arith.addi %5, %15 : vector<8x256xi32>
    %17 = arith.select %14, %16, %5 : vector<8x256xi1>, vector<8x256xi32>
    %c1_i32_4 = arith.constant 1 : i32
    %18 = vector.broadcast %c1_i32_4 : i32 to vector<8x256xi32>
    %19 = arith.cmpi sge, %17, %18 : vector<8x256xi32>
    %c14_i32 = arith.constant 14 : i32
    %20 = vector.broadcast %c14_i32 : i32 to vector<8x256xi32>
    %21 = arith.cmpi sle, %17, %20 : vector<8x256xi32>
    %cst = arith.constant 0.000000e+00 : f32
    %22 = vector.broadcast %cst : f32 to vector<8x256xf32>
    %cst_5 = arith.constant 0.000000e+00 : f32
    %23 = vector.broadcast %cst_5 : f32 to vector<8x17xf32>
    %24 = vector.extract_strided_slice %0 {offsets = [0, 0], sizes = [8, 239], strides = [1, 1]} : vector<8x256xf32> to vector<8x239xf32>
    %25 = tpu.concatenate %23, %24 in 1 : vector<8x17xf32>, vector<8x239xf32> -> vector<8x256xf32>
    %cst_6 = arith.constant 0.000000e+00 : f32
    %26 = vector.broadcast %cst_6 : f32 to vector<8x256xf32>
    %27 = arith.select %19, %25, %26 : vector<8x256xi1>, vector<8x256xf32>
    %c0_7 = arith.constant 0 : index
    %c0_8 = arith.constant 0 : index
    %c0_9 = arith.constant 0 : index
    %28 = vector.load %arg1[%c0_7, %c0_8, %c0_9] : memref<9x8x8xf32, #tpu.memory_space<vmem>>, vector<1x8x8xf32>
    %29 = vector.shape_cast %28 : vector<1x8x8xf32> to vector<8x8xf32>
    %cst_10 = arith.constant dense<0.000000e+00> : vector<8x256xf32>
    %30 = tpu.matmul %29, %27, %cst_10 {dimension_numbers = #tpu.dot_dimension_numbers<[1], [0], [0], [1], [0, 0, 1, 1], [], []>, precision = #tpu.contract_precision<fp32>} : vector<8x8xf32>, vector<8x256xf32>, vector<8x256xf32> -> vector<8x256xf32>
    %31 = arith.addf %22, %30 : vector<8x256xf32>
    %cst_11 = arith.constant 0.000000e+00 : f32
    %32 = vector.broadcast %cst_11 : f32 to vector<8x16xf32>
    %33 = vector.extract_strided_slice %0 {offsets = [0, 0], sizes = [8, 240], strides = [1, 1]} : vector<8x256xf32> to vector<8x240xf32>
    %34 = tpu.concatenate %32, %33 in 1 : vector<8x16xf32>, vector<8x240xf32> -> vector<8x256xf32>
    %c1 = arith.constant 1 : index
    %c0_12 = arith.constant 0 : index
    %c0_13 = arith.constant 0 : index
    %35 = vector.load %arg1[%c1, %c0_12, %c0_13] : memref<9x8x8xf32, #tpu.memory_space<vmem>>, vector<1x8x8xf32>
    %36 = vector.shape_cast %35 : vector<1x8x8xf32> to vector<8x8xf32>
    %cst_14 = arith.constant dense<0.000000e+00> : vector<8x256xf32>
    %37 = tpu.matmul %36, %34, %cst_14 {dimension_numbers = #tpu.dot_dimension_numbers<[1], [0], [0], [1], [0, 0, 1, 1], [], []>, precision = #tpu.contract_precision<fp32>} : vector<8x8xf32>, vector<8x256xf32>, vector<8x256xf32> -> vector<8x256xf32>
    %38 = arith.addf %31, %37 : vector<8x256xf32>
    %cst_15 = arith.constant 0.000000e+00 : f32
    %39 = vector.broadcast %cst_15 : f32 to vector<8x15xf32>
    %40 = vector.extract_strided_slice %0 {offsets = [0, 0], sizes = [8, 241], strides = [1, 1]} : vector<8x256xf32> to vector<8x241xf32>
    %41 = tpu.concatenate %39, %40 in 1 : vector<8x15xf32>, vector<8x241xf32> -> vector<8x256xf32>
    %cst_16 = arith.constant 0.000000e+00 : f32
    %42 = vector.broadcast %cst_16 : f32 to vector<8x256xf32>
    %43 = arith.select %21, %41, %42 : vector<8x256xi1>, vector<8x256xf32>
    %c2 = arith.constant 2 : index
    %c0_17 = arith.constant 0 : index
    %c0_18 = arith.constant 0 : index
    %44 = vector.load %arg1[%c2, %c0_17, %c0_18] : memref<9x8x8xf32, #tpu.memory_space<vmem>>, vector<1x8x8xf32>
    %45 = vector.shape_cast %44 : vector<1x8x8xf32> to vector<8x8xf32>
    %cst_19 = arith.constant dense<0.000000e+00> : vector<8x256xf32>
    %46 = tpu.matmul %45, %43, %cst_19 {dimension_numbers = #tpu.dot_dimension_numbers<[1], [0], [0], [1], [0, 0, 1, 1], [], []>, precision = #tpu.contract_precision<fp32>} : vector<8x8xf32>, vector<8x256xf32>, vector<8x256xf32> -> vector<8x256xf32>
    %47 = arith.addf %38, %46 : vector<8x256xf32>
    %cst_20 = arith.constant 0.000000e+00 : f32
    %48 = vector.broadcast %cst_20 : f32 to vector<8x1xf32>
    %49 = vector.extract_strided_slice %0 {offsets = [0, 0], sizes = [8, 255], strides = [1, 1]} : vector<8x256xf32> to vector<8x255xf32>
    %50 = tpu.concatenate %48, %49 in 1 : vector<8x1xf32>, vector<8x255xf32> -> vector<8x256xf32>
    %cst_21 = arith.constant 0.000000e+00 : f32
    %51 = vector.broadcast %cst_21 : f32 to vector<8x256xf32>
    %52 = arith.select %19, %50, %51 : vector<8x256xi1>, vector<8x256xf32>
    %c3 = arith.constant 3 : index
    %c0_22 = arith.constant 0 : index
    %c0_23 = arith.constant 0 : index
    %53 = vector.load %arg1[%c3, %c0_22, %c0_23] : memref<9x8x8xf32, #tpu.memory_space<vmem>>, vector<1x8x8xf32>
    %54 = vector.shape_cast %53 : vector<1x8x8xf32> to vector<8x8xf32>
    %cst_24 = arith.constant dense<0.000000e+00> : vector<8x256xf32>
    %55 = tpu.matmul %54, %52, %cst_24 {dimension_numbers = #tpu.dot_dimension_numbers<[1], [0], [0], [1], [0, 0, 1, 1], [], []>, precision = #tpu.contract_precision<fp32>} : vector<8x8xf32>, vector<8x256xf32>, vector<8x256xf32> -> vector<8x256xf32>
    %56 = arith.addf %47, %55 : vector<8x256xf32>
    %c4 = arith.constant 4 : index
    %c0_25 = arith.constant 0 : index
    %c0_26 = arith.constant 0 : index
    %57 = vector.load %arg1[%c4, %c0_25, %c0_26] : memref<9x8x8xf32, #tpu.memory_space<vmem>>, vector<1x8x8xf32>
    %58 = vector.shape_cast %57 : vector<1x8x8xf32> to vector<8x8xf32>
    %cst_27 = arith.constant dense<0.000000e+00> : vector<8x256xf32>
    %59 = tpu.matmul %58, %0, %cst_27 {dimension_numbers = #tpu.dot_dimension_numbers<[1], [0], [0], [1], [0, 0, 1, 1], [], []>, precision = #tpu.contract_precision<fp32>} : vector<8x8xf32>, vector<8x256xf32>, vector<8x256xf32> -> vector<8x256xf32>
    %60 = arith.addf %56, %59 : vector<8x256xf32>
    %cst_28 = arith.constant 0.000000e+00 : f32
    %61 = vector.broadcast %cst_28 : f32 to vector<8x1xf32>
    %62 = vector.extract_strided_slice %0 {offsets = [0, 1], sizes = [8, 255], strides = [1, 1]} : vector<8x256xf32> to vector<8x255xf32>
    %63 = tpu.concatenate %62, %61 in 1 : vector<8x255xf32>, vector<8x1xf32> -> vector<8x256xf32>
    %cst_29 = arith.constant 0.000000e+00 : f32
    %64 = vector.broadcast %cst_29 : f32 to vector<8x256xf32>
    %65 = arith.select %21, %63, %64 : vector<8x256xi1>, vector<8x256xf32>
    %c5 = arith.constant 5 : index
    %c0_30 = arith.constant 0 : index
    %c0_31 = arith.constant 0 : index
    %66 = vector.load %arg1[%c5, %c0_30, %c0_31] : memref<9x8x8xf32, #tpu.memory_space<vmem>>, vector<1x8x8xf32>
    %67 = vector.shape_cast %66 : vector<1x8x8xf32> to vector<8x8xf32>
    %cst_32 = arith.constant dense<0.000000e+00> : vector<8x256xf32>
    %68 = tpu.matmul %67, %65, %cst_32 {dimension_numbers = #tpu.dot_dimension_numbers<[1], [0], [0], [1], [0, 0, 1, 1], [], []>, precision = #tpu.contract_precision<fp32>} : vector<8x8xf32>, vector<8x256xf32>, vector<8x256xf32> -> vector<8x256xf32>
    %69 = arith.addf %60, %68 : vector<8x256xf32>
    %cst_33 = arith.constant 0.000000e+00 : f32
    %70 = vector.broadcast %cst_33 : f32 to vector<8x15xf32>
    %71 = vector.extract_strided_slice %0 {offsets = [0, 15], sizes = [8, 241], strides = [1, 1]} : vector<8x256xf32> to vector<8x241xf32>
    %72 = tpu.concatenate %71, %70 in 1 : vector<8x241xf32>, vector<8x15xf32> -> vector<8x256xf32>
    %cst_34 = arith.constant 0.000000e+00 : f32
    %73 = vector.broadcast %cst_34 : f32 to vector<8x256xf32>
    %74 = arith.select %19, %72, %73 : vector<8x256xi1>, vector<8x256xf32>
    %c6 = arith.constant 6 : index
    %c0_35 = arith.constant 0 : index
    %c0_36 = arith.constant 0 : index
    %75 = vector.load %arg1[%c6, %c0_35, %c0_36] : memref<9x8x8xf32, #tpu.memory_space<vmem>>, vector<1x8x8xf32>
    %76 = vector.shape_cast %75 : vector<1x8x8xf32> to vector<8x8xf32>
    %cst_37 = arith.constant dense<0.000000e+00> : vector<8x256xf32>
    %77 = tpu.matmul %76, %74, %cst_37 {dimension_numbers = #tpu.dot_dimension_numbers<[1], [0], [0], [1], [0, 0, 1, 1], [], []>, precision = #tpu.contract_precision<fp32>} : vector<8x8xf32>, vector<8x256xf32>, vector<8x256xf32> -> vector<8x256xf32>
    %78 = arith.addf %69, %77 : vector<8x256xf32>
    %cst_38 = arith.constant 0.000000e+00 : f32
    %79 = vector.broadcast %cst_38 : f32 to vector<8x16xf32>
    %80 = vector.extract_strided_slice %0 {offsets = [0, 16], sizes = [8, 240], strides = [1, 1]} : vector<8x256xf32> to vector<8x240xf32>
    %81 = tpu.concatenate %80, %79 in 1 : vector<8x240xf32>, vector<8x16xf32> -> vector<8x256xf32>
    %c7 = arith.constant 7 : index
    %c0_39 = arith.constant 0 : index
    %c0_40 = arith.constant 0 : index
    %82 = vector.load %arg1[%c7, %c0_39, %c0_40] : memref<9x8x8xf32, #tpu.memory_space<vmem>>, vector<1x8x8xf32>
    %83 = vector.shape_cast %82 : vector<1x8x8xf32> to vector<8x8xf32>
    %cst_41 = arith.constant dense<0.000000e+00> : vector<8x256xf32>
    %84 = tpu.matmul %83, %81, %cst_41 {dimension_numbers = #tpu.dot_dimension_numbers<[1], [0], [0], [1], [0, 0, 1, 1], [], []>, precision = #tpu.contract_precision<fp32>} : vector<8x8xf32>, vector<8x256xf32>, vector<8x256xf32> -> vector<8x256xf32>
    %85 = arith.addf %78, %84 : vector<8x256xf32>
    %cst_42 = arith.constant 0.000000e+00 : f32
    %86 = vector.broadcast %cst_42 : f32 to vector<8x17xf32>
    %87 = vector.extract_strided_slice %0 {offsets = [0, 17], sizes = [8, 239], strides = [1, 1]} : vector<8x256xf32> to vector<8x239xf32>
    %88 = tpu.concatenate %87, %86 in 1 : vector<8x239xf32>, vector<8x17xf32> -> vector<8x256xf32>
    %cst_43 = arith.constant 0.000000e+00 : f32
    %89 = vector.broadcast %cst_43 : f32 to vector<8x256xf32>
    %90 = arith.select %21, %88, %89 : vector<8x256xi1>, vector<8x256xf32>
    %c8 = arith.constant 8 : index
    %c0_44 = arith.constant 0 : index
    %c0_45 = arith.constant 0 : index
    %91 = vector.load %arg1[%c8, %c0_44, %c0_45] : memref<9x8x8xf32, #tpu.memory_space<vmem>>, vector<1x8x8xf32>
    %92 = vector.shape_cast %91 : vector<1x8x8xf32> to vector<8x8xf32>
    %cst_46 = arith.constant dense<0.000000e+00> : vector<8x256xf32>
    %93 = tpu.matmul %92, %90, %cst_46 {dimension_numbers = #tpu.dot_dimension_numbers<[1], [0], [0], [1], [0, 0, 1, 1], [], []>, precision = #tpu.contract_precision<fp32>} : vector<8x8xf32>, vector<8x256xf32>, vector<8x256xf32> -> vector<8x256xf32>
    %94 = arith.addf %85, %93 : vector<8x256xf32>
    %cst_47 = arith.constant dense<0.000000e+00> : vector<8xf32>
    %95 = vector.multi_reduction <add>, %94, %cst_47 [1] : vector<8x256xf32> to vector<8xf32>
    %96 = vector.shape_cast %95 : vector<8xf32> to vector<8x1xf32>
    %cst_48 = arith.constant 2.560000e+02 : f32
    %97 = vector.broadcast %cst_48 : f32 to vector<8x1xf32>
    %98 = arith.divf %96, %97 : vector<8x1xf32>
    %99 = vector.broadcast %98 : vector<8x1xf32> to vector<8x256xf32>
    %100 = arith.subf %94, %99 : vector<8x256xf32>
    %101 = arith.mulf %100, %100 : vector<8x256xf32>
    %cst_49 = arith.constant dense<0.000000e+00> : vector<8xf32>
    %102 = vector.multi_reduction <add>, %101, %cst_49 [1] : vector<8x256xf32> to vector<8xf32>
    %103 = vector.shape_cast %102 : vector<8xf32> to vector<8x1xf32>
    %cst_50 = arith.constant 2.560000e+02 : f32
    %104 = vector.broadcast %cst_50 : f32 to vector<8x1xf32>
    %105 = arith.divf %103, %104 : vector<8x1xf32>
    %106 = vector.broadcast %98 : vector<8x1xf32> to vector<8x256xf32>
    %107 = arith.subf %94, %106 : vector<8x256xf32>
    %cst_51 = arith.constant 9.99999974E-6 : f32
    %108 = vector.broadcast %cst_51 : f32 to vector<8x1xf32>
    %109 = arith.addf %105, %108 : vector<8x1xf32>
    %110 = math.rsqrt %109 : vector<8x1xf32>
    %111 = vector.broadcast %110 : vector<8x1xf32> to vector<8x256xf32>
    %112 = arith.mulf %107, %111 : vector<8x256xf32>
    %c0_52 = arith.constant 0 : index
    %c0_53 = arith.constant 0 : index
    %113 = vector.load %arg2[%c0_52, %c0_53] : memref<8x1xf32, #tpu.memory_space<vmem>>, vector<8x1xf32>
    %114 = vector.broadcast %113 : vector<8x1xf32> to vector<8x256xf32>
    %115 = arith.mulf %112, %114 : vector<8x256xf32>
    %c0_54 = arith.constant 0 : index
    %c0_55 = arith.constant 0 : index
    %116 = vector.load %arg3[%c0_54, %c0_55] : memref<8x1xf32, #tpu.memory_space<vmem>>, vector<8x1xf32>
    %117 = vector.broadcast %116 : vector<8x1xf32> to vector<8x256xf32>
    %118 = arith.addf %115, %117 : vector<8x256xf32>
    %cst_56 = arith.constant 0.000000e+00 : f32
    %119 = vector.broadcast %cst_56 : f32 to vector<8x256xf32>
    %120 = arith.cmpf ogt, %118, %119 : vector<8x256xf32>
    %cst_57 = arith.constant 0.00999999977 : f32
    %121 = vector.broadcast %cst_57 : f32 to vector<8x256xf32>
    %122 = arith.mulf %121, %118 : vector<8x256xf32>
    %123 = arith.select %120, %118, %122 : vector<8x256xi1>, vector<8x256xf32>
    %cst_58 = arith.constant 0.000000e+00 : f32
    %124 = vector.broadcast %cst_58 : f32 to vector<8x256xf32>
    %cst_59 = arith.constant 0.000000e+00 : f32
    %125 = vector.broadcast %cst_59 : f32 to vector<8x17xf32>
    %126 = vector.extract_strided_slice %123 {offsets = [0, 0], sizes = [8, 239], strides = [1, 1]} : vector<8x256xf32> to vector<8x239xf32>
    %127 = tpu.concatenate %125, %126 in 1 : vector<8x17xf32>, vector<8x239xf32> -> vector<8x256xf32>
    %cst_60 = arith.constant 0.000000e+00 : f32
    %128 = vector.broadcast %cst_60 : f32 to vector<8x256xf32>
    %129 = arith.select %19, %127, %128 : vector<8x256xi1>, vector<8x256xf32>
    %c0_61 = arith.constant 0 : index
    %c0_62 = arith.constant 0 : index
    %c0_63 = arith.constant 0 : index
    %130 = vector.load %arg4[%c0_61, %c0_62, %c0_63] : memref<9x8x8xf32, #tpu.memory_space<vmem>>, vector<1x8x8xf32>
    %131 = vector.shape_cast %130 : vector<1x8x8xf32> to vector<8x8xf32>
    %cst_64 = arith.constant dense<0.000000e+00> : vector<8x256xf32>
    %132 = tpu.matmul %131, %129, %cst_64 {dimension_numbers = #tpu.dot_dimension_numbers<[1], [0], [0], [1], [0, 0, 1, 1], [], []>, precision = #tpu.contract_precision<fp32>} : vector<8x8xf32>, vector<8x256xf32>, vector<8x256xf32> -> vector<8x256xf32>
    %133 = arith.addf %124, %132 : vector<8x256xf32>
    %cst_65 = arith.constant 0.000000e+00 : f32
    %134 = vector.broadcast %cst_65 : f32 to vector<8x16xf32>
    %135 = vector.extract_strided_slice %123 {offsets = [0, 0], sizes = [8, 240], strides = [1, 1]} : vector<8x256xf32> to vector<8x240xf32>
    %136 = tpu.concatenate %134, %135 in 1 : vector<8x16xf32>, vector<8x240xf32> -> vector<8x256xf32>
    %c1_66 = arith.constant 1 : index
    %c0_67 = arith.constant 0 : index
    %c0_68 = arith.constant 0 : index
    %137 = vector.load %arg4[%c1_66, %c0_67, %c0_68] : memref<9x8x8xf32, #tpu.memory_space<vmem>>, vector<1x8x8xf32>
    %138 = vector.shape_cast %137 : vector<1x8x8xf32> to vector<8x8xf32>
    %cst_69 = arith.constant dense<0.000000e+00> : vector<8x256xf32>
    %139 = tpu.matmul %138, %136, %cst_69 {dimension_numbers = #tpu.dot_dimension_numbers<[1], [0], [0], [1], [0, 0, 1, 1], [], []>, precision = #tpu.contract_precision<fp32>} : vector<8x8xf32>, vector<8x256xf32>, vector<8x256xf32> -> vector<8x256xf32>
    %140 = arith.addf %133, %139 : vector<8x256xf32>
    %cst_70 = arith.constant 0.000000e+00 : f32
    %141 = vector.broadcast %cst_70 : f32 to vector<8x15xf32>
    %142 = vector.extract_strided_slice %123 {offsets = [0, 0], sizes = [8, 241], strides = [1, 1]} : vector<8x256xf32> to vector<8x241xf32>
    %143 = tpu.concatenate %141, %142 in 1 : vector<8x15xf32>, vector<8x241xf32> -> vector<8x256xf32>
    %cst_71 = arith.constant 0.000000e+00 : f32
    %144 = vector.broadcast %cst_71 : f32 to vector<8x256xf32>
    %145 = arith.select %21, %143, %144 : vector<8x256xi1>, vector<8x256xf32>
    %c2_72 = arith.constant 2 : index
    %c0_73 = arith.constant 0 : index
    %c0_74 = arith.constant 0 : index
    %146 = vector.load %arg4[%c2_72, %c0_73, %c0_74] : memref<9x8x8xf32, #tpu.memory_space<vmem>>, vector<1x8x8xf32>
    %147 = vector.shape_cast %146 : vector<1x8x8xf32> to vector<8x8xf32>
    %cst_75 = arith.constant dense<0.000000e+00> : vector<8x256xf32>
    %148 = tpu.matmul %147, %145, %cst_75 {dimension_numbers = #tpu.dot_dimension_numbers<[1], [0], [0], [1], [0, 0, 1, 1], [], []>, precision = #tpu.contract_precision<fp32>} : vector<8x8xf32>, vector<8x256xf32>, vector<8x256xf32> -> vector<8x256xf32>
    %149 = arith.addf %140, %148 : vector<8x256xf32>
    %cst_76 = arith.constant 0.000000e+00 : f32
    %150 = vector.broadcast %cst_76 : f32 to vector<8x1xf32>
    %151 = vector.extract_strided_slice %123 {offsets = [0, 0], sizes = [8, 255], strides = [1, 1]} : vector<8x256xf32> to vector<8x255xf32>
    %152 = tpu.concatenate %150, %151 in 1 : vector<8x1xf32>, vector<8x255xf32> -> vector<8x256xf32>
    %cst_77 = arith.constant 0.000000e+00 : f32
    %153 = vector.broadcast %cst_77 : f32 to vector<8x256xf32>
    %154 = arith.select %19, %152, %153 : vector<8x256xi1>, vector<8x256xf32>
    %c3_78 = arith.constant 3 : index
    %c0_79 = arith.constant 0 : index
    %c0_80 = arith.constant 0 : index
    %155 = vector.load %arg4[%c3_78, %c0_79, %c0_80] : memref<9x8x8xf32, #tpu.memory_space<vmem>>, vector<1x8x8xf32>
    %156 = vector.shape_cast %155 : vector<1x8x8xf32> to vector<8x8xf32>
    %cst_81 = arith.constant dense<0.000000e+00> : vector<8x256xf32>
    %157 = tpu.matmul %156, %154, %cst_81 {dimension_numbers = #tpu.dot_dimension_numbers<[1], [0], [0], [1], [0, 0, 1, 1], [], []>, precision = #tpu.contract_precision<fp32>} : vector<8x8xf32>, vector<8x256xf32>, vector<8x256xf32> -> vector<8x256xf32>
    %158 = arith.addf %149, %157 : vector<8x256xf32>
    %c4_82 = arith.constant 4 : index
    %c0_83 = arith.constant 0 : index
    %c0_84 = arith.constant 0 : index
    %159 = vector.load %arg4[%c4_82, %c0_83, %c0_84] : memref<9x8x8xf32, #tpu.memory_space<vmem>>, vector<1x8x8xf32>
    %160 = vector.shape_cast %159 : vector<1x8x8xf32> to vector<8x8xf32>
    %cst_85 = arith.constant dense<0.000000e+00> : vector<8x256xf32>
    %161 = tpu.matmul %160, %123, %cst_85 {dimension_numbers = #tpu.dot_dimension_numbers<[1], [0], [0], [1], [0, 0, 1, 1], [], []>, precision = #tpu.contract_precision<fp32>} : vector<8x8xf32>, vector<8x256xf32>, vector<8x256xf32> -> vector<8x256xf32>
    %162 = arith.addf %158, %161 : vector<8x256xf32>
    %cst_86 = arith.constant 0.000000e+00 : f32
    %163 = vector.broadcast %cst_86 : f32 to vector<8x1xf32>
    %164 = vector.extract_strided_slice %123 {offsets = [0, 1], sizes = [8, 255], strides = [1, 1]} : vector<8x256xf32> to vector<8x255xf32>
    %165 = tpu.concatenate %164, %163 in 1 : vector<8x255xf32>, vector<8x1xf32> -> vector<8x256xf32>
    %cst_87 = arith.constant 0.000000e+00 : f32
    %166 = vector.broadcast %cst_87 : f32 to vector<8x256xf32>
    %167 = arith.select %21, %165, %166 : vector<8x256xi1>, vector<8x256xf32>
    %c5_88 = arith.constant 5 : index
    %c0_89 = arith.constant 0 : index
    %c0_90 = arith.constant 0 : index
    %168 = vector.load %arg4[%c5_88, %c0_89, %c0_90] : memref<9x8x8xf32, #tpu.memory_space<vmem>>, vector<1x8x8xf32>
    %169 = vector.shape_cast %168 : vector<1x8x8xf32> to vector<8x8xf32>
    %cst_91 = arith.constant dense<0.000000e+00> : vector<8x256xf32>
    %170 = tpu.matmul %169, %167, %cst_91 {dimension_numbers = #tpu.dot_dimension_numbers<[1], [0], [0], [1], [0, 0, 1, 1], [], []>, precision = #tpu.contract_precision<fp32>} : vector<8x8xf32>, vector<8x256xf32>, vector<8x256xf32> -> vector<8x256xf32>
    %171 = arith.addf %162, %170 : vector<8x256xf32>
    %cst_92 = arith.constant 0.000000e+00 : f32
    %172 = vector.broadcast %cst_92 : f32 to vector<8x15xf32>
    %173 = vector.extract_strided_slice %123 {offsets = [0, 15], sizes = [8, 241], strides = [1, 1]} : vector<8x256xf32> to vector<8x241xf32>
    %174 = tpu.concatenate %173, %172 in 1 : vector<8x241xf32>, vector<8x15xf32> -> vector<8x256xf32>
    %cst_93 = arith.constant 0.000000e+00 : f32
    %175 = vector.broadcast %cst_93 : f32 to vector<8x256xf32>
    %176 = arith.select %19, %174, %175 : vector<8x256xi1>, vector<8x256xf32>
    %c6_94 = arith.constant 6 : index
    %c0_95 = arith.constant 0 : index
    %c0_96 = arith.constant 0 : index
    %177 = vector.load %arg4[%c6_94, %c0_95, %c0_96] : memref<9x8x8xf32, #tpu.memory_space<vmem>>, vector<1x8x8xf32>
    %178 = vector.shape_cast %177 : vector<1x8x8xf32> to vector<8x8xf32>
    %cst_97 = arith.constant dense<0.000000e+00> : vector<8x256xf32>
    %179 = tpu.matmul %178, %176, %cst_97 {dimension_numbers = #tpu.dot_dimension_numbers<[1], [0], [0], [1], [0, 0, 1, 1], [], []>, precision = #tpu.contract_precision<fp32>} : vector<8x8xf32>, vector<8x256xf32>, vector<8x256xf32> -> vector<8x256xf32>
    %180 = arith.addf %171, %179 : vector<8x256xf32>
    %cst_98 = arith.constant 0.000000e+00 : f32
    %181 = vector.broadcast %cst_98 : f32 to vector<8x16xf32>
    %182 = vector.extract_strided_slice %123 {offsets = [0, 16], sizes = [8, 240], strides = [1, 1]} : vector<8x256xf32> to vector<8x240xf32>
    %183 = tpu.concatenate %182, %181 in 1 : vector<8x240xf32>, vector<8x16xf32> -> vector<8x256xf32>
    %c7_99 = arith.constant 7 : index
    %c0_100 = arith.constant 0 : index
    %c0_101 = arith.constant 0 : index
    %184 = vector.load %arg4[%c7_99, %c0_100, %c0_101] : memref<9x8x8xf32, #tpu.memory_space<vmem>>, vector<1x8x8xf32>
    %185 = vector.shape_cast %184 : vector<1x8x8xf32> to vector<8x8xf32>
    %cst_102 = arith.constant dense<0.000000e+00> : vector<8x256xf32>
    %186 = tpu.matmul %185, %183, %cst_102 {dimension_numbers = #tpu.dot_dimension_numbers<[1], [0], [0], [1], [0, 0, 1, 1], [], []>, precision = #tpu.contract_precision<fp32>} : vector<8x8xf32>, vector<8x256xf32>, vector<8x256xf32> -> vector<8x256xf32>
    %187 = arith.addf %180, %186 : vector<8x256xf32>
    %cst_103 = arith.constant 0.000000e+00 : f32
    %188 = vector.broadcast %cst_103 : f32 to vector<8x17xf32>
    %189 = vector.extract_strided_slice %123 {offsets = [0, 17], sizes = [8, 239], strides = [1, 1]} : vector<8x256xf32> to vector<8x239xf32>
    %190 = tpu.concatenate %189, %188 in 1 : vector<8x239xf32>, vector<8x17xf32> -> vector<8x256xf32>
    %cst_104 = arith.constant 0.000000e+00 : f32
    %191 = vector.broadcast %cst_104 : f32 to vector<8x256xf32>
    %192 = arith.select %21, %190, %191 : vector<8x256xi1>, vector<8x256xf32>
    %c8_105 = arith.constant 8 : index
    %c0_106 = arith.constant 0 : index
    %c0_107 = arith.constant 0 : index
    %193 = vector.load %arg4[%c8_105, %c0_106, %c0_107] : memref<9x8x8xf32, #tpu.memory_space<vmem>>, vector<1x8x8xf32>
    %194 = vector.shape_cast %193 : vector<1x8x8xf32> to vector<8x8xf32>
    %cst_108 = arith.constant dense<0.000000e+00> : vector<8x256xf32>
    %195 = tpu.matmul %194, %192, %cst_108 {dimension_numbers = #tpu.dot_dimension_numbers<[1], [0], [0], [1], [0, 0, 1, 1], [], []>, precision = #tpu.contract_precision<fp32>} : vector<8x8xf32>, vector<8x256xf32>, vector<8x256xf32> -> vector<8x256xf32>
    %196 = arith.addf %187, %195 : vector<8x256xf32>
    %cst_109 = arith.constant dense<0.000000e+00> : vector<8xf32>
    %197 = vector.multi_reduction <add>, %196, %cst_109 [1] : vector<8x256xf32> to vector<8xf32>
    %198 = vector.shape_cast %197 : vector<8xf32> to vector<8x1xf32>
    %cst_110 = arith.constant 2.560000e+02 : f32
    %199 = vector.broadcast %cst_110 : f32 to vector<8x1xf32>
    %200 = arith.divf %198, %199 : vector<8x1xf32>
    %201 = vector.broadcast %200 : vector<8x1xf32> to vector<8x256xf32>
    %202 = arith.subf %196, %201 : vector<8x256xf32>
    %203 = arith.mulf %202, %202 : vector<8x256xf32>
    %cst_111 = arith.constant dense<0.000000e+00> : vector<8xf32>
    %204 = vector.multi_reduction <add>, %203, %cst_111 [1] : vector<8x256xf32> to vector<8xf32>
    %205 = vector.shape_cast %204 : vector<8xf32> to vector<8x1xf32>
    %cst_112 = arith.constant 2.560000e+02 : f32
    %206 = vector.broadcast %cst_112 : f32 to vector<8x1xf32>
    %207 = arith.divf %205, %206 : vector<8x1xf32>
    %208 = vector.broadcast %200 : vector<8x1xf32> to vector<8x256xf32>
    %209 = arith.subf %196, %208 : vector<8x256xf32>
    %cst_113 = arith.constant 9.99999974E-6 : f32
    %210 = vector.broadcast %cst_113 : f32 to vector<8x1xf32>
    %211 = arith.addf %207, %210 : vector<8x1xf32>
    %212 = math.rsqrt %211 : vector<8x1xf32>
    %213 = vector.broadcast %212 : vector<8x1xf32> to vector<8x256xf32>
    %214 = arith.mulf %209, %213 : vector<8x256xf32>
    %c0_114 = arith.constant 0 : index
    %c0_115 = arith.constant 0 : index
    %215 = vector.load %arg5[%c0_114, %c0_115] : memref<8x1xf32, #tpu.memory_space<vmem>>, vector<8x1xf32>
    %216 = vector.broadcast %215 : vector<8x1xf32> to vector<8x256xf32>
    %217 = arith.mulf %214, %216 : vector<8x256xf32>
    %c0_116 = arith.constant 0 : index
    %c0_117 = arith.constant 0 : index
    %218 = vector.load %arg6[%c0_116, %c0_117] : memref<8x1xf32, #tpu.memory_space<vmem>>, vector<8x1xf32>
    %219 = vector.broadcast %218 : vector<8x1xf32> to vector<8x256xf32>
    %220 = arith.addf %217, %219 : vector<8x256xf32>
    %221 = arith.addf %220, %0 : vector<8x256xf32>
    %cst_118 = arith.constant 0.000000e+00 : f32
    %222 = vector.broadcast %cst_118 : f32 to vector<8x256xf32>
    %223 = arith.cmpf ogt, %221, %222 : vector<8x256xf32>
    %cst_119 = arith.constant 0.00999999977 : f32
    %224 = vector.broadcast %cst_119 : f32 to vector<8x256xf32>
    %225 = arith.mulf %224, %221 : vector<8x256xf32>
    %226 = arith.select %223, %221, %225 : vector<8x256xi1>, vector<8x256xf32>
    %c0_120 = arith.constant 0 : index
    %c0_121 = arith.constant 0 : index
    %227 = vector.load %arg7[%c0_120, %c0_121] : memref<8x256xf32, #tpu.memory_space<vmem>>, vector<8x256xf32>
    tpu.vector_store %arg7[%c0_120, %c0_121], %226 {strides = array<i32>} : memref<8x256xf32, #tpu.memory_space<vmem>>, vector<8x256xf32>,
    return
  }
}

</mosaic_0001>

<bundles_post_ra>
// kernel: tile.23
= control target key start
LH: loop header
LB: loop body
LE: loop exit
PB: predicated region body
PF: predicated region fallthrough
CT: control target
= control target key end

     0   :  { %s22_s0 = inlined_call_operand.vmem [shape: f32[4], index: 0, kind: input, shape index: {}]   ;;  %s23_s1 = inlined_call_operand.vmem [shape: f32[2,4], index: 1, kind: output, shape index: {}]  }
   0x1   :  { %v4_v0 = vld [vmem:[%s22_s0] ss:$0 sm:$0xff] }
   0x2   :  { %5 = vst [vmem:[%s23_s1] sm:$0x3] %v4_v0 }

// kernel: tile.0
= control target key start
LH: loop header
LB: loop body
LE: loop exit
PB: predicated region body
PF: predicated region fallthrough
CT: control target
= control target key end

     0   :  { %s35_s8 = smov 125   ;;  %vm8_vm0 = vcmask 7168   ;;  %s36_s11 = smov 126   ;;  %s62_s0 = inlined_call_operand.vmem [shape: f32[2,4], index: 0, kind: input, shape index: {}]   ;;  %s63_s1 = inlined_call_operand.vmem [shape: f32[8,1], index: 1, kind: output, shape index: {}]  }
   0x1   :  { %v5_v0 = vld [vmem:[%s62_s0] sm:$0x3]  ;;  %s34_s0 = smov 127  }
   0x2   :  { %6 = vst [vmem:[#allocation0] sm:$0x3] %v5_v0 }
   0x9   :  { %v10_v1 = vld [vmem:[#allocation0] sm:$0x3]  }
   0xa   :  { %v22_v2 = vld [vmem:[#allocation0] sm:$0x3]   ;;  %11 = vrot.lane.b32.xlu0 %v10_v1, %s34_s0 }
   0xb   :  { %23 = vrot.lane.b32.xlu1 %v22_v2, %s35_s8  ;;  %v7_v3 = vld [vmem:[#allocation0] sm:$0x3]  }
   0xc   :  { %v16_v4 = vld [vmem:[#allocation0] sm:$0x3]   ;;  %9 = vst.msk [vmem:[%s63_s1] ss:$4 sm:$0x3] %vm8_vm0, %v7_v3  }
   0xe   :  { %17 = vrot.lane.b32.xlu0 %v16_v4, %s36_s11 }
  0x7c   :  { %v12_v5 = vpop.permute.xlu0 %11  }
  0x7d   :  { %v24_v6 = vpop.permute.xlu1 %23   ;;  %28 = vst.msk [vmem:[%s63_s1 + $0x1] ss:$4 sm:$0x3] %vm8_vm0, %v12_v5  }
  0x7e   :  { %30 = vst.msk [vmem:[%s63_s1 + $0x3] ss:$4 sm:$0x3] %vm8_vm0, %v24_v6  }
  0x80   :  { %v18_v7 = vpop.permute.xlu0 %17  }
  0x81   :  { %29 = vst.msk [vmem:[%s63_s1 + $0x2] ss:$4 sm:$0x3] %vm8_vm0, %v18_v7  }

// kernel: unet_res_block.1
= control target key start
LH: loop header
LB: loop body
LE: loop exit
PB: predicated region body
PF: predicated region fallthrough
CT: control target
= control target key end

     0   :  { %v9890_v1 = vmov 0.0   ;;  %s8830_s26 = smov 16   ;;  %s8831_s27 = smov 17   ;;  %vm84_vm0 = vcmask 64512   ;;  %v28_v4 = vlaneseq  ;;  %vm77_vm1 = vcmask 130048   ;;  %s9882_s0 = inlined_call_operand.vmem [shape: f32[8,256], index: 0, kind: input, shape index: {}]   ;;  %s9883_s1 = inlined_call_operand.vmem [shape: f32[9,8,8], index: 1, kind: input, shape index: {}]   ;;  %s9884_s2 = inlined_call_operand.vmem [shape: f32[8,1], index: 2, kind: input, shape index: {}]   ;;  %s9885_s3 = inlined_call_operand.vmem [shape: f32[8,1], index: 3, kind: input, shape index: {}]   ;;  %s9886_s4 = inlined_call_operand.vmem [shape: f32[9,8,8], index: 4, kind: input, shape index: {}]   ;;  %s9887_s5 = inlined_call_operand.vmem [shape: f32[8,1], index: 5, kind: input, shape index: {}]   ;;  %s9888_s6 = inlined_call_operand.vmem [shape: f32[8,1], index: 6, kind: input, shape index: {}]   ;;  %s9889_s7 = inlined_call_operand.vmem [shape: f32[8,256], index: 7, kind: output, shape index: {}]  }
   0x1   :  { %v8882_v0 = vld [vmem:[%s9882_s0] sm:$0xff]  ;;  %154 = vmatprep.mubr.f32.mxu0 %v9890_v1  ;;  %240 = vmatprep.mubr.f32.mxu1 %v9890_v1  ;;  %v8893_v2 = vld [vmem:[%s9882_s0 + $0x8] sm:$0xff]  ;;  %s8832_s30 = smov 15   ;;  %s8833_s8 = smov 1   ;;  %vm65_vm2 = vcmask 138240   ;;  %v9900_v21 = vmov 0 }
   0x2   :  { %73 = vrot.lane.b32.xlu0 %v8882_v0, %s8830_s26  ;;  %61 = vrot.lane.b32.xlu1 %v8882_v0, %s8831_s27  ;;  %s8834_s9 = smov 127   ;;  %s8835_s10 = smov 113   ;;  %v8795_v3 = vld [vmem:[%s9883_s1 + $0x8] sm:$0xff]  ;;  %v29_v7 = vand.u32 127, %v28_v4  ;;  %v72_v10 = vld [vmem:[%s9883_s1] sm:$0xff]  ;;  %v9903_v23 = vmov 0 }
   0x3   :  { %s8836_s11 = smov 112   ;;  %s8837_s12 = smov 111   ;;  %v86_v5 = vsel %vm84_vm0, %v8795_v3, 0  ;;  %v554_v12 = vsel %vm84_vm0, %v72_v10, 0  ;;  %vm1025_vm5 = vcmask 121856   ;;  %v8796_v41 = vld [vmem:[%s9883_s1 + $0x10] sm:$0xff] }
   0x4   :  { %v8927_v6 = vand.u32 4294901760, %v86_v5  ;;  %v30_v9 = vadd.s32 128, %v29_v7  ;;  %v35_v13 = vand.u32 15, %v29_v7  ;;  %v8938_v18 = vand.u32 4294901760, %v554_v12  ;;  %v8797_v10 = vld [vmem:[%s9883_s1 + $0x18] sm:$0xff] }
   0x5   :  { %v9906_v44 = vmov 0  ;;  %v1035_v48 = vsel %vm84_vm0, %v8796_v41, 0  ;;  %v9909_v55 = vmov 0  ;;  %vm1508_vm8 = vcmask 7168  }
   0x6   :  { %75 = vrot.lane.b32.xlu0 %v8893_v2, %s8830_s26  ;;  %63 = vrot.lane.b32.xlu1 %v8893_v2, %s8831_s27  ;;  %v8930_v8 = vsub.f32 %v86_v5, %v8927_v6  ;;  %v42_v14 = vand.u32 15, %v30_v9  ;;  %vm8945_vm3 = vcmp.ge.s32.totalorder %v35_v13, 1  ;;  %v8958_v29 = vsub.f32 %v554_v12, %v8938_v18 }
   0x7   :  { %v9901_v21 = vsel %vm8945_vm3, 4294967295, %v9900_v21  ;;  %vm8989_vm7 = vcmp.le.s32.totalorder %v35_v13, 14  ;;  %v8994_v57 = vand.u32 4294901760, %v1035_v48  ;;  %vm2463_vm9 = vcmask 1039360  }
   0x8   :  { %v157_v11 = vand.u32 4294901760, %v8930_v8  ;;  %9902 = vst [vmem:[#allocation2_spill] sm:$0xff] %v9901_v21  ;;  %vm8950_vm4 = vcmp.ge.s32.totalorder %v42_v14, 1  ;;  %v625_v40 = vand.u32 4294901760, %v8958_v29  ;;  %vm8974_vm6 = vcmp.le.s32.totalorder %v42_v14, 14 }
   0x9   :  { %v9904_v23 = vsel %vm8950_vm4, 4294967295, %v9903_v23  ;;  %v9907_v44 = vsel %vm8974_vm6, 4294967295, %v9906_v44  ;;  %v9910_v55 = vsel %vm8989_vm7, 4294967295, %v9909_v55  ;;  %v9005_v63 = vsub.f32 %v1035_v48, %v8994_v57 }
   0xa   :  { %1023 = vrot.lane.b32.xlu1 %v8893_v2, %s8832_s30  ;;  %1021 = vrot.lane.b32.xlu0 %v8882_v0, %s8832_s30  ;;  %v158_v20 = vsub.f32 %v8930_v8, %v157_v11  ;;  %9905 = vst [vmem:[#allocation3_spill] sm:$0xff] %v9904_v23  ;;  %9908 = vst [vmem:[#allocation4_spill] sm:$0xff] %v9907_v44  ;;  %v626_v52 = vsub.f32 %v8958_v29, %v625_v40  ;;  %vm2946_vm10 = vcmask 924672   ;;  %vm3429_vm11 = vcmask 916480  }
   0xb   :  { %9911 = vst [vmem:[#allocation5_spill] sm:$0xff] %v9910_v55  ;;  %v1106_v14 = vand.u32 4294901760, %v9005_v63  ;;  %vm3910_vm12 = vcmask 908288  }
   0xc   :  { %v159_v33 = vand.u32 4294901760, %v158_v20  ;;  %v627_v62 = vand.u32 4294901760, %v626_v52 }
   0xe   :  { %1506 = vrot.lane.b32.xlu1 %v8893_v2, %s8833_s8  ;;  %1504 = vrot.lane.b32.xlu0 %v8882_v0, %s8833_s8 }
  0x12   :  { %2459 = vrot.lane.b32.xlu1 %v8882_v0, %s8834_s9  ;;  %2461 = vrot.lane.b32.xlu0 %v8893_v2, %s8834_s9 }
  0x16   :  { %2942 = vrot.lane.b32.xlu1 %v8882_v0, %s8835_s10  ;;  %2944 = vrot.lane.b32.xlu0 %v8893_v2, %s8835_s10 }
  0x1a   :  { %3425 = vrot.lane.b32.xlu1 %v8882_v0, %s8836_s11  ;;  %3427 = vrot.lane.b32.xlu0 %v8893_v2, %s8836_s11 }
  0x1e   :  { %3906 = vrot.lane.b32.xlu1 %v8882_v0, %s8837_s12  ;;  %3908 = vrot.lane.b32.xlu0 %v8893_v2, %s8837_s12 }
  0x74   :  { %v74_v15 = vpop.permute.xlu0 %73  ;;  %v62_v16 = vpop.permute.xlu1 %61 }
  0x75   :  { %v81_v17 = vsel %vm77_vm1, 0.0, %v74_v15  ;;  %v69_v22 = vsel %vm65_vm2, 0.0, %v62_v16 }
  0x76   :  { %v8940_v19 = vand.u32 4294901760, %v81_v17  ;;  %v70_v30 = vsel %vm8945_vm3, %v69_v22, 0.0 }
  0x77   :  { %v8966_v39 = vand.u32 4294901760, %v70_v30 }
  0x78   :  { %v203_v24 = vsub.f32 %v81_v17, %v8940_v19  ;;  %v76_v25 = vpop.permute.xlu0 %75  ;;  %v64_v26 = vpop.permute.xlu1 %63 }
  0x79   :  { %v78_v27 = vsel %vm77_vm1, %v74_v15, %v76_v25  ;;  %v66_v28 = vsel %vm65_vm2, %v62_v16, %v64_v26  ;;  %v671_v49 = vsub.f32 %v70_v30, %v8966_v39  ;;  %v1518_v16 = vsel %vm84_vm0, %v8797_v10, 0 }
  0x7a   :  { %v118_v31 = vand.u32 4294901760, %v78_v27  ;;  %v71_v32 = vsel %vm8950_vm4, %v66_v28, 0.0  ;;  %v204_v34 = vand.u32 4294901760, %v203_v24  ;;  %v9033_v22 = vand.u32 4294901760, %v1518_v16 }
  0x7b   :  { %v8964_v35 = vand.u32 4294901760, %v71_v32  ;;  %v672_v59 = vand.u32 4294901760, %v671_v49 }
  0x7c   :  { %v197_v36 = vsub.f32 %v78_v27, %v118_v31  ;;  %119 = vmatprep.subr.mxu0 %v118_v31  ;;  %v1024_v37 = vpop.permute.xlu1 %1023  ;;  %v1022_v38 = vpop.permute.xlu0 %1021  ;;  %v205_v46 = vsub.f32 %v203_v24, %v204_v34  ;;  %v9047_v28 = vsub.f32 %v1518_v16, %v9033_v22 }
  0x7d   :  { %121 = vmatpush1.msra.mxu0 %v8940_v19  ;;  %v665_v42 = vsub.f32 %v71_v32, %v8964_v35  ;;  %v1026_v45 = vsel %vm1025_vm5, %v1022_v38, %v1024_v37  ;;  %v1029_v56 = vsel %vm1025_vm5, 0.0, %v1022_v38  ;;  %v673_v9 = vsub.f32 %v671_v49, %v672_v59 }
  0x7e   :  { %160 = vmatmul.mubr.f32.vlgmr.msra.gmra.mxu0 %v159_v33  ;;  %280 = vmatprep.subr.mxu0 %v197_v36  ;;  %v198_v43 = vand.u32 4294901760, %v197_v36  ;;  %v1031_v50 = vsel %vm8974_vm6, %v1026_v45, 0.0  ;;  %v206_v54 = vand.u32 4294901760, %v205_v46  ;;  %v1030_v61 = vsel %vm8989_vm7, %v1029_v56, 0.0 }
  0x7f   :  { %283 = vmatpush1.msra.mxu0 %v203_v24  ;;  %316 = vmatprep.mubr.f32.mxu0 %v9890_v1  ;;  %v666_v53 = vand.u32 4294901760, %v665_v42  ;;  %v8997_v58 = vand.u32 4294901760, %v1031_v50  ;;  %v9010_v7 = vand.u32 4294901760, %v1030_v61  ;;  %v9085_v45 = vand.u32 4294901760, %v8882_v0 }
  0x80   :  { %434 = vmatprep.subr.mxu0 %v198_v43  ;;  %v199_v47 = vsub.f32 %v197_v36, %v198_v43  ;;  %v1507_v3 = vpop.permute.xlu1 %1506  ;;  %v1505_v4 = vpop.permute.xlu0 %1504 }
  0x81   :  { %v667_v60 = vsub.f32 %v665_v42, %v666_v53  ;;  %v1146_v5 = vsub.f32 %v1031_v50, %v8997_v58  ;;  %v1509_v13 = vsel %vm1508_vm8, %v1505_v4, %v1507_v3  ;;  %v1152_v17 = vsub.f32 %v1030_v61, %v9010_v7 }
  0x82   :  { %319 = vmatmul.mubr.f32.vlgmr.msra.gmra.mxu0 %v8930_v8  ;;  %v200_v51 = vand.u32 4294901760, %v199_v47  ;;  %v674_v8 = vand.u32 4294901760, %v673_v9  ;;  %v1512_v20 = vsel %vm1508_vm8, 0.0, %v1505_v4 }
  0x83   :  { %438 = vmatpush1.msra.mxu0 %v204_v34  ;;  %471 = vmatprep.mubr.f32.mxu0 %v9890_v1  ;;  %v668_v12 = vand.u32 4294901760, %v667_v60  ;;  %v1147_v15 = vand.u32 4294901760, %v1146_v5  ;;  %v1153_v26 = vand.u32 4294901760, %v1152_v17  ;;  %v8798_v34 = vld [vmem:[%s9883_s1 + $0x20] sm:$0xff] }
  0x84   :  { %201 = vmatprep.subr.mxu1 %v200_v51  ;;  %587 = vmatprep.subr.mxu0 %v8964_v35  ;;  %v1990_v37 = vsel %vm84_vm0, %v8798_v34, 0  ;;  %v2462_v47 = vpop.permute.xlu0 %2461  ;;  %v8799_v51 = vld [vmem:[%s9883_s1 + $0x28] sm:$0xff] }
  0x85   :  { %207 = vmatpush1.msra.mxu1 %v206_v54  ;;  %v1148_v25 = vsub.f32 %v1146_v5, %v1147_v15  ;;  %v1154_v33 = vsub.f32 %v1152_v17, %v1153_v26  ;;  %v2467_v52 = vsel %vm2463_vm9, %v2462_v47, 0.0  ;;  %v2460_v54 = vpop.permute.xlu1 %2459  ;;  %v2473_v56 = vsel %vm84_vm0, %v8799_v51, 0 }
  0x86   :  { %242 = vmatmul.mubr.f32.vlgmr.msra.gmra.mxu1 %v8927_v6  ;;  %356 = vmatprep.subr.mxu1 %v118_v31  ;;  %v2464_v61 = vsel %vm2463_vm9, %v2460_v54, %v2462_v47 }
  0x87   :  { %473 = vmatmul.mubr.f32.vlgmr.msra.gmra.mxu0 %v8927_v6  ;;  %358 = vmatpush1.msra.mxu1 %v8940_v19  ;;  %v1155_v41 = vand.u32 4294901760, %v1154_v33  ;;  %v2468_v4 = vsel %vm8989_vm7, %v2464_v61, 0.0 }
  0x88   :  { %589 = vmatpush1.msra.mxu0 %v8966_v39  ;;  %510 = vmatprep.subr.mxu1 %v118_v31  ;;  %v1149_v31 = vand.u32 4294901760, %v1148_v25  ;;  %v2945_v10 = vpop.permute.xlu0 %2944 }
  0x89   :  { %748 = vmatprep.subr.mxu0 %v665_v42  ;;  %391 = vmatprep.mubr.f32.mxu1 %v9890_v1  ;;  %v2950_v16 = vsel %vm2946_vm10, %v2945_v10, 0.0 }
  0x8a   :  { %622 = vmatprep.mubr.f32.mxu0 %v9890_v1  ;;  %395 = vmatmul.mubr.f32.vlgmr.msra.gmra.mxu1 %v157_v11  ;;  %v1514_v11 = vsel %vm8950_vm4, %v1509_v13, 0.0  ;;  %v9148_v13 = vand.u32 4294901760, %v2468_v4  ;;  %v2952_v25 = vsel %vm8950_vm4, %v2950_v16, 0.0 }
  0x8b   :  { %512 = vmatpush1.msra.mxu1 %v8940_v19  ;;  %628 = vmatmul.mubr.f32.vlgmr.msra.gmra.mxu0 %v627_v62  ;;  %v1107_v19 = vsub.f32 %v9005_v63, %v1106_v14  ;;  %v9036_v24 = vand.u32 4294901760, %v1514_v11 }
  0x8c   :  { %751 = vmatpush1.msra.mxu0 %v671_v49  ;;  %669 = vmatprep.subr.mxu1 %v668_v12 }
  0x8d   :  { %902 = vmatprep.subr.mxu0 %v666_v53  ;;  %545 = vmatprep.mubr.f32.mxu1 %v9890_v1  ;;  %v1108_v27 = vand.u32 4294901760, %v1107_v19  ;;  %v1629_v30 = vsub.f32 %v1514_v11, %v9036_v24  ;;  %v2943_v11 = vpop.permute.xlu1 %2942 }
  0x8e   :  { %784 = vmatprep.mubr.f32.mxu0 %v9890_v1  ;;  %547 = vmatmul.mubr.f32.vlgmr.msra.gmra.mxu1 %v8927_v6  ;;  %v1513_v6 = vsel %vm8945_vm3, %v1512_v20, 0.0 }
  0x8f   :  { %675 = vmatpush1.msra.mxu1 %v674_v8  ;;  %787 = vmatmul.mubr.f32.vlgmr.msra.gmra.mxu0 %v8958_v29  ;;  %v9053_v32 = vand.u32 4294901760, %v1513_v6  ;;  %v1630_v36 = vand.u32 4294901760, %v1629_v30 }
  0x90   :  { %906 = vmatpush1.msra.mxu0 %v672_v59  ;;  %824 = vmatprep.subr.mxu1 %v8964_v35  ;;  %v2469_v59 = vsel %vm8974_vm6, %v2467_v52, 0.0 }
  0x91   :  { %708 = vmatprep.mubr.f32.mxu1 %v9890_v1  ;;  %939 = vmatprep.mubr.f32.mxu0 %v9890_v1  ;;  %v1635_v38 = vsub.f32 %v1513_v6, %v9053_v32  ;;  %v9126_v3 = vand.u32 4294901760, %v2469_v59  ;;  %v2947_v6 = vsel %vm2946_vm10, %v2943_v11, %v2945_v10  ;;  %v3426_v47 = vpop.permute.xlu1 %3425 }
  0x92   :  { %710 = vmatmul.mubr.f32.vlgmr.msra.gmra.mxu1 %v8938_v18  ;;  %1068 = vmatprep.subr.mxu0 %v8997_v58 }
  0x93   :  { %826 = vmatpush1.msra.mxu1 %v8966_v39  ;;  %941 = vmatmul.mubr.f32.vlgmr.msra.gmra.mxu0 %v8938_v18  ;;  %v1636_v42 = vand.u32 4294901760, %v1635_v38  ;;  %v9144_v12 = vsub.f32 %v2469_v59, %v9126_v3 }
  0x94   :  { %978 = vmatprep.subr.mxu1 %v8964_v35  ;;  %1070 = vmatpush1.msra.mxu0 %v9010_v7  ;;  %v1589_v35 = vand.u32 4294901760, %v9047_v28 }
  0x95   :  { %1229 = vmatprep.subr.mxu0 %v1146_v5  ;;  %859 = vmatprep.mubr.f32.mxu1 %v9890_v1  ;;  %v1637_v49 = vsub.f32 %v1635_v38, %v1636_v42  ;;  %v2585_v19 = vand.u32 4294901760, %v9144_v12 }
  0x96   :  { %1103 = vmatprep.mubr.f32.mxu0 %v9890_v1  ;;  %863 = vmatmul.mubr.f32.vlgmr.msra.gmra.mxu1 %v625_v40  ;;  %v1590_v29 = vsub.f32 %v9047_v28, %v1589_v35  ;;  %v1631_v40 = vsub.f32 %v1629_v30, %v1630_v36 }
  0x97   :  { %980 = vmatpush1.msra.mxu1 %v8966_v39  ;;  %1109 = vmatmul.mubr.f32.vlgmr.msra.gmra.mxu0 %v1108_v27  ;;  %v9072_v39 = vand.u32 4294901760, %v1990_v37 }
  0x98   :  { %1232 = vmatpush1.msra.mxu0 %v1152_v17  ;;  %1150 = vmatprep.subr.mxu1 %v1149_v31  ;;  %v1591_v43 = vand.u32 4294901760, %v1590_v29  ;;  %v1632_v48 = vand.u32 4294901760, %v1631_v40  ;;  %v2951_v31 = vsel %vm8945_vm3, %v2947_v6, 0.0 }
  0x99   :  { %1383 = vmatprep.subr.mxu0 %v1147_v15  ;;  %1013 = vmatprep.mubr.f32.mxu1 %v9890_v1  ;;  %v9088_v46 = vsub.f32 %v1990_v37, %v9072_v39  ;;  %v8800_v15 = vld [vmem:[%s9883_s1 + $0x30] sm:$0xff] }
  0x9a   :  { %1265 = vmatprep.mubr.f32.mxu0 %v9890_v1  ;;  %1015 = vmatmul.mubr.f32.vlgmr.msra.gmra.mxu1 %v8938_v18  ;;  %v9078_v18 = vand.u32 4294901760, %v8893_v2  ;;  %v2956_v20 = vsel %vm84_vm0, %v8800_v15, 0 }
  0x9b   :  { %1156 = vmatpush1.msra.mxu1 %v1155_v41  ;;  %1268 = vmatmul.mubr.f32.vlgmr.msra.gmra.mxu0 %v9005_v63  ;;  %v2061_v53 = vand.u32 4294901760, %v9088_v46  ;;  %v9123_v63 = vand.u32 4294901760, %v2473_v56  ;;  %v9173_v27 = vand.u32 4294901760, %v2956_v20  ;;  %v3428_v41 = vpop.permute.xlu0 %3427 }
  0x9c   :  { %1387 = vmatpush1.msra.mxu0 %v1153_v26  ;;  %1305 = vmatprep.subr.mxu1 %v8997_v58  ;;  %v9095_v50 = vsub.f32 %v8893_v2, %v9078_v18  ;;  %v9108_v2 = vsub.f32 %v8882_v0, %v9085_v45 }
  0x9d   :  { %1189 = vmatprep.mubr.f32.mxu1 %v9890_v1  ;;  %1420 = vmatprep.mubr.f32.mxu0 %v9890_v1  ;;  %v2062_v0 = vsub.f32 %v9088_v46, %v2061_v53  ;;  %v9139_v9 = vsub.f32 %v2473_v56, %v9123_v63  ;;  %v9188_v33 = vsub.f32 %v2956_v20, %v9173_v27 }
  0x9e   :  { %1191 = vmatmul.mubr.f32.vlgmr.msra.gmra.mxu1 %v8994_v57  ;;  %1551 = vmatprep.subr.mxu0 %v9036_v24  ;;  %v2102_v60 = vand.u32 4294901760, %v9095_v50  ;;  %v2108_v62 = vand.u32 4294901760, %v9108_v2 }
  0x9f   :  { %1307 = vmatpush1.msra.mxu1 %v9010_v7  ;;  %1422 = vmatmul.mubr.f32.vlgmr.msra.gmra.mxu0 %v8994_v57  ;;  %v2063_v5 = vand.u32 4294901760, %v2062_v0  ;;  %v2544_v8 = vand.u32 4294901760, %v9139_v9  ;;  %v3027_v29 = vand.u32 4294901760, %v9188_v33 }
  0xa0   :  { %1459 = vmatprep.subr.mxu1 %v8997_v58  ;;  %1553 = vmatpush1.msra.mxu0 %v9053_v32  ;;  %v1638_v58 = vand.u32 4294901760, %v1637_v49 }
  0xa1   :  { %1712 = vmatprep.subr.mxu0 %v1629_v30  ;;  %1340 = vmatprep.mubr.f32.mxu1 %v9890_v1  ;;  %v2545_v26 = vsub.f32 %v9139_v9, %v2544_v8  ;;  %v2586_v30 = vsub.f32 %v9144_v12, %v2585_v19 }
  0xa2   :  { %1586 = vmatprep.mubr.f32.mxu0 %v9890_v1  ;;  %1344 = vmatmul.mubr.f32.vlgmr.msra.gmra.mxu1 %v1106_v14 }
  0xa3   :  { %1461 = vmatpush1.msra.mxu1 %v9010_v7  ;;  %1592 = vmatmul.mubr.f32.vlgmr.msra.gmra.mxu0 %v1591_v43  ;;  %v2109_v7 = vsub.f32 %v9108_v2, %v2108_v62 }
  0xa4   :  { %1715 = vmatpush1.msra.mxu0 %v1635_v38  ;;  %1633 = vmatprep.subr.mxu1 %v1632_v48  ;;  %v8801_v38 = vld [vmem:[%s9883_s1 + $0x38] sm:$0xff] }
  0xa5   :  { %1866 = vmatprep.subr.mxu0 %v1630_v36  ;;  %1494 = vmatprep.mubr.f32.mxu1 %v9890_v1  ;;  %v2110_v17 = vand.u32 4294901760, %v2109_v7  ;;  %v9197_v36 = vand.u32 4294901760, %v2951_v31 }
  0xa6   :  { %1748 = vmatprep.mubr.f32.mxu0 %v9890_v1  ;;  %1496 = vmatmul.mubr.f32.vlgmr.msra.gmra.mxu1 %v8994_v57  ;;  %v2103_v57 = vsub.f32 %v9095_v50, %v2102_v60 }
  0xa7   :  { %1639 = vmatpush1.msra.mxu1 %v1638_v58  ;;  %1751 = vmatmul.mubr.f32.vlgmr.msra.gmra.mxu0 %v9047_v28  ;;  %v9176_v28 = vand.u32 4294901760, %v2952_v25  ;;  %v3073_v43 = vsub.f32 %v2951_v31, %v9197_v36 }
  0xa8   :  { %1870 = vmatpush1.msra.mxu0 %v1636_v42  ;;  %1788 = vmatprep.subr.mxu1 %v9036_v24  ;;  %v2104_v14 = vand.u32 4294901760, %v2103_v57  ;;  %v3437_v42 = vsel %vm84_vm0, %v8801_v38, 0 }
  0xa9   :  { %1672 = vmatprep.mubr.f32.mxu1 %v9890_v1  ;;  %1903 = vmatprep.mubr.f32.mxu0 %v9890_v1  ;;  %v9193_v34 = vsub.f32 %v2952_v25, %v9176_v28  ;;  %v9218_v48 = vand.u32 4294901760, %v3437_v42  ;;  %v3074_v51 = vand.u32 4294901760, %v3073_v43 }
  0xaa   :  { %1674 = vmatmul.mubr.f32.vlgmr.msra.gmra.mxu1 %v9033_v22  ;;  %2023 = vmatprep.subr.mxu0 %v9078_v18 }
  0xab   :  { %1790 = vmatpush1.msra.mxu1 %v9053_v32  ;;  %1905 = vmatmul.mubr.f32.vlgmr.msra.gmra.mxu0 %v9033_v22  ;;  %v3068_v40 = vand.u32 4294901760, %v9193_v34  ;;  %v3075_v59 = vsub.f32 %v3073_v43, %v3074_v51 }
  0xac   :  { %1942 = vmatprep.subr.mxu1 %v9036_v24  ;;  %1823 = vmatprep.mubr.f32.mxu1 %v9890_v1  ;;  %v2590_v24 = vsub.f32 %v2468_v4, %v9148_v13 }
  0xad   :  { %2025 = vmatpush1.msra.mxu0 %v9085_v45  ;;  %2058 = vmatprep.mubr.f32.mxu0 %v9890_v1 }
  0xae   :  { %1827 = vmatmul.mubr.f32.vlgmr.msra.gmra.mxu1 %v1589_v35  ;;  %2184 = vmatprep.subr.mxu0 %v9095_v50  ;;  %v2587_v35 = vand.u32 4294901760, %v2586_v30  ;;  %v3069_v50 = vsub.f32 %v9193_v34, %v3068_v40 }
  0xaf   :  { %1944 = vmatpush1.msra.mxu1 %v9053_v32  ;;  %2064 = vmatmul.mubr.f32.vlgmr.msra.gmra.mxu0 %v2063_v5  ;;  %v2546_v32 = vand.u32 4294901760, %v2545_v26  ;;  %v3076_v5 = vand.u32 4294901760, %v3075_v59 }
  0xb0   :  { %1977 = vmatprep.mubr.f32.mxu1 %v9890_v1  ;;  %2187 = vmatpush1.msra.mxu0 %v9108_v2  ;;  %v3909_v2 = vpop.permute.xlu0 %3908  ;;  %v3070_v56 = vand.u32 4294901760, %v3069_v50 }
  0xb1   :  { %2220 = vmatprep.mubr.f32.mxu0 %v9890_v1  ;;  %2105 = vmatprep.subr.mxu1 %v2104_v14  ;;  %v3914_v0 = vsel %vm3910_vm12, %v3909_v2, 0.0 }
  0xb2   :  { %1979 = vmatmul.mubr.f32.vlgmr.msra.gmra.mxu1 %v9033_v22  ;;  %2338 = vmatprep.subr.mxu0 %v2102_v60  ;;  %v2591_v22 = vand.u32 4294901760, %v2590_v24  ;;  %v8802_v60 = vld [vmem:[%s9883_s1 + $0x40] sm:$0xff]  ;;  %v3916_v7 = vsel %vm8974_vm6, %v3914_v0, 0.0 }
  0xb3   :  { %2223 = vmatmul.mubr.f32.vlgmr.msra.gmra.mxu0 %v9088_v46  ;;  %2111 = vmatpush1.msra.mxu1 %v2110_v17  ;;  %v3920_v57 = vsel %vm84_vm0, %v8802_v60, 0 }
  0xb4   :  { %2144 = vmatprep.mubr.f32.mxu1 %v9890_v1  ;;  %2342 = vmatpush1.msra.mxu0 %v2108_v62  ;;  %v2592_v37 = vsub.f32 %v2590_v24, %v2591_v22  ;;  %v3907_v62 = vpop.permute.xlu1 %3906 }
  0xb5   :  { %2375 = vmatprep.mubr.f32.mxu0 %v9890_v1  ;;  %2506 = vmatprep.subr.mxu0 %v9126_v3  ;;  %v3911_v10 = vsel %vm3910_vm12, %v3907_v62, %v3909_v2 }
  0xb6   :  { %2146 = vmatmul.mubr.f32.vlgmr.msra.gmra.mxu1 %v9072_v39  ;;  %2260 = vmatprep.subr.mxu1 %v9078_v18  ;;  %v2593_v46 = vand.u32 4294901760, %v2592_v37 }
  0xb7   :  { %2377 = vmatmul.mubr.f32.vlgmr.msra.gmra.mxu0 %v9072_v39  ;;  %2262 = vmatpush1.msra.mxu1 %v9085_v45 }
  0xb8   :  { %2508 = vmatpush1.msra.mxu0 %v9148_v13  ;;  %2295 = vmatprep.mubr.f32.mxu1 %v9890_v1 }
  0xb9   :  { %2667 = vmatprep.subr.mxu0 %v9144_v12  ;;  %2541 = vmatprep.mubr.f32.mxu0 %v9890_v1  ;;  %v9262_v12 = vand.u32 4294901760, %v3920_v57 }
  0xba   :  { %2299 = vmatmul.mubr.f32.vlgmr.msra.gmra.mxu1 %v2061_v53  ;;  %2414 = vmatprep.subr.mxu1 %v9078_v18  ;;  %v3433_v18 = vsel %vm3429_vm11, %v3428_v41, 0.0  ;;  %v9232_v53 = vsub.f32 %v3437_v42, %v9218_v48 }
  0xbb   :  { %2547 = vmatmul.mubr.f32.vlgmr.msra.gmra.mxu0 %v2546_v32  ;;  %2416 = vmatpush1.msra.mxu1 %v9085_v45  ;;  %v3028_v45 = vsub.f32 %v9188_v33, %v3027_v29  ;;  %v9221_v49 = vand.u32 4294901760, %v3433_v18  ;;  %v9276_v17 = vsub.f32 %v3920_v57, %v9262_v12 }
  0xbc   :  { %2670 = vmatpush1.msra.mxu0 %v2590_v24  ;;  %2588 = vmatprep.subr.mxu1 %v2587_v35  ;;  %v3508_v61 = vand.u32 4294901760, %v9232_v53 }
  0xbd   :  { %2821 = vmatprep.subr.mxu0 %v2585_v19  ;;  %2449 = vmatprep.mubr.f32.mxu1 %v9890_v1  ;;  %v3029_v52 = vand.u32 4294901760, %v3028_v45  ;;  %v3548_v54 = vsub.f32 %v3433_v18, %v9221_v49  ;;  %v3991_v24 = vand.u32 4294901760, %v9276_v17 }
  0xbe   :  { %2703 = vmatprep.mubr.f32.mxu0 %v9890_v1  ;;  %2451 = vmatmul.mubr.f32.vlgmr.msra.gmra.mxu1 %v9072_v39  ;;  %v3430_v39 = vsel %vm3429_vm11, %v3426_v47, %v3428_v41 }
  0xbf   :  { %2594 = vmatpush1.msra.mxu1 %v2593_v46  ;;  %2706 = vmatmul.mubr.f32.vlgmr.msra.gmra.mxu0 %v9139_v9  ;;  %v9239_v58 = vand.u32 4294901760, %v3430_v39  ;;  %v3509_v9 = vsub.f32 %v9232_v53, %v3508_v61 }
  0xc0   :  { %2825 = vmatpush1.msra.mxu0 %v2591_v22  ;;  %2743 = vmatprep.subr.mxu1 %v9126_v3 }
  0xc1   :  { %2627 = vmatprep.mubr.f32.mxu1 %v9890_v1  ;;  %2858 = vmatprep.mubr.f32.mxu0 %v9890_v1  ;;  %v3554_v4 = vsub.f32 %v3430_v39, %v9239_v58  ;;  %v3510_v16 = vand.u32 4294901760, %v3509_v9 }
  0xc2   :  { %2629 = vmatmul.mubr.f32.vlgmr.msra.gmra.mxu1 %v9123_v63  ;;  %2989 = vmatprep.subr.mxu0 %v9176_v28 }
  0xc3   :  { %2745 = vmatpush1.msra.mxu1 %v9148_v13  ;;  %2860 = vmatmul.mubr.f32.vlgmr.msra.gmra.mxu0 %v9123_v63  ;;  %v3555_v15 = vand.u32 4294901760, %v3554_v4 }
  0xc4   :  { %2897 = vmatprep.subr.mxu1 %v9126_v3  ;;  %2991 = vmatpush1.msra.mxu0 %v9197_v36  ;;  %v3549_v3 = vand.u32 4294901760, %v3548_v54 }
  0xc5   :  { %3150 = vmatprep.subr.mxu0 %v9193_v34  ;;  %2778 = vmatprep.mubr.f32.mxu1 %v9890_v1  ;;  %v3556_v19 = vsub.f32 %v3554_v4, %v3555_v15 }
  0xc6   :  { %3024 = vmatprep.mubr.f32.mxu0 %v9890_v1  ;;  %2782 = vmatmul.mubr.f32.vlgmr.msra.gmra.mxu1 %v2544_v8  ;;  %v3550_v14 = vsub.f32 %v3548_v54, %v3549_v3 }
  0xc7   :  { %2899 = vmatpush1.msra.mxu1 %v9148_v13  ;;  %3030 = vmatmul.mubr.f32.vlgmr.msra.gmra.mxu0 %v3029_v52  ;;  %v9265_v13 = vand.u32 4294901760, %v3916_v7  ;;  %v3557_v6 = vand.u32 4294901760, %v3556_v19 }
  0xc8   :  { %3153 = vmatpush1.msra.mxu0 %v3073_v43  ;;  %3071 = vmatprep.subr.mxu1 %v3070_v56  ;;  %v3551_v11 = vand.u32 4294901760, %v3550_v14 }
  0xc9   :  { %3304 = vmatprep.subr.mxu0 %v3068_v40  ;;  %2932 = vmatprep.mubr.f32.mxu1 %v9890_v1  ;;  %v4031_v8 = vsub.f32 %v3916_v7, %v9265_v13 }
  0xca   :  { %3186 = vmatprep.mubr.f32.mxu0 %v9890_v1  ;;  %2934 = vmatmul.mubr.f32.vlgmr.msra.gmra.mxu1 %v9123_v63  ;;  %v3915_v63 = vsel %vm8989_vm7, %v3911_v10, 0.0 }
  0xcb   :  { %3077 = vmatpush1.msra.mxu1 %v3076_v5  ;;  %3189 = vmatmul.mubr.f32.vlgmr.msra.gmra.mxu0 %v9188_v33  ;;  %v3954_v20 = vand.u32 4294901760, %v3915_v63  ;;  %v4032_v25 = vand.u32 4294901760, %v4031_v8 }
  0xcc   :  { %3308 = vmatpush1.msra.mxu0 %v3074_v51  ;;  %3226 = vmatprep.subr.mxu1 %v9176_v28 }
  0xcd   :  { %3110 = vmatprep.mubr.f32.mxu1 %v9890_v1  ;;  %3341 = vmatprep.mubr.f32.mxu0 %v9890_v1  ;;  %v4037_v26 = vsub.f32 %v3915_v63, %v3954_v20  ;;  %v4033_v30 = vsub.f32 %v4031_v8, %v4032_v25 }
  0xce   :  { %3112 = vmatmul.mubr.f32.vlgmr.msra.gmra.mxu1 %v9173_v27  ;;  %3470 = vmatprep.subr.mxu0 %v9221_v49 }
  0xcf   :  { %3228 = vmatpush1.msra.mxu1 %v9197_v36  ;;  %3343 = vmatmul.mubr.f32.vlgmr.msra.gmra.mxu0 %v9173_v27  ;;  %v4038_v22 = vand.u32 4294901760, %v4037_v26  ;;  %v4034_v31 = vand.u32 4294901760, %v4033_v30 }
  0xd0   :  { %3380 = vmatprep.subr.mxu1 %v9176_v28  ;;  %3472 = vmatpush1.msra.mxu0 %v9239_v58  ;;  %v3992_v28 = vsub.f32 %v9276_v17, %v3991_v24 }
  0xd1   :  { %3631 = vmatprep.subr.mxu0 %v3548_v54  ;;  %3261 = vmatprep.mubr.f32.mxu1 %v9890_v1  ;;  %v4039_v32 = vsub.f32 %v4037_v26, %v4038_v22 }
  0xd2   :  { %3505 = vmatprep.mubr.f32.mxu0 %v9890_v1  ;;  %3265 = vmatmul.mubr.f32.vlgmr.msra.gmra.mxu1 %v3027_v29 }
  0xd3   :  { %3382 = vmatpush1.msra.mxu1 %v9197_v36  ;;  %3511 = vmatmul.mubr.f32.vlgmr.msra.gmra.mxu0 %v3510_v16  ;;  %v4040_v33 = vand.u32 4294901760, %v4039_v32 }
  0xd4   :  { %3634 = vmatpush1.msra.mxu0 %v3554_v4  ;;  %3552 = vmatprep.subr.mxu1 %v3551_v11 }
  0xd5   :  { %3785 = vmatprep.subr.mxu0 %v3549_v3  ;;  %3415 = vmatprep.mubr.f32.mxu1 %v9890_v1 }
  0xd6   :  { %3667 = vmatprep.mubr.f32.mxu0 %v9890_v1  ;;  %3417 = vmatmul.mubr.f32.vlgmr.msra.gmra.mxu1 %v9173_v27  ;;  %v3993_v27 = vand.u32 4294901760, %v3992_v28 }
  0xd7   :  { %3558 = vmatpush1.msra.mxu1 %v3557_v6  ;;  %3670 = vmatmul.mubr.f32.vlgmr.msra.gmra.mxu0 %v9232_v53 }
  0xd8   :  { %3789 = vmatpush1.msra.mxu0 %v3555_v15  ;;  %3707 = vmatprep.subr.mxu1 %v9221_v49 }
  0xd9   :  { %3591 = vmatprep.mubr.f32.mxu1 %v9890_v1  ;;  %3822 = vmatprep.mubr.f32.mxu0 %v9890_v1 }
  0xda   :  { %3593 = vmatmul.mubr.f32.vlgmr.msra.gmra.mxu1 %v9218_v48  ;;  %3953 = vmatprep.subr.mxu0 %v9265_v13 }
  0xdb   :  { %3709 = vmatpush1.msra.mxu1 %v9239_v58  ;;  %3824 = vmatmul.mubr.f32.vlgmr.msra.gmra.mxu0 %v9218_v48 }
  0xdc   :  { %3861 = vmatprep.subr.mxu1 %v9221_v49  ;;  %3955 = vmatpush1.msra.mxu0 %v3954_v20 }
  0xdd   :  { %4114 = vmatprep.subr.mxu0 %v4031_v8  ;;  %3742 = vmatprep.mubr.f32.mxu1 %v9890_v1 }
  0xde   :  { %3988 = vmatprep.mubr.f32.mxu0 %v9890_v1  ;;  %3746 = vmatmul.mubr.f32.vlgmr.msra.gmra.mxu1 %v3508_v61 }
  0xdf   :  { %3863 = vmatpush1.msra.mxu1 %v9239_v58  ;;  %3994 = vmatmul.mubr.f32.vlgmr.msra.gmra.mxu0 %v3993_v27 }
  0xe0   :  { %4117 = vmatpush1.msra.mxu0 %v4037_v26  ;;  %4035 = vmatprep.subr.mxu1 %v4034_v31 }
  0xe1   :  { %4268 = vmatprep.subr.mxu0 %v4032_v25  ;;  %3896 = vmatprep.mubr.f32.mxu1 %v9890_v1 }
  0xe2   :  { %4150 = vmatprep.mubr.f32.mxu0 %v9890_v1  ;;  %3898 = vmatmul.mubr.f32.vlgmr.msra.gmra.mxu1 %v9218_v48 }
  0xe3   :  { %4041 = vmatpush1.msra.mxu1 %v4040_v33  ;;  %4153 = vmatmul.mubr.f32.vlgmr.msra.gmra.mxu0 %v9276_v17 }
  0xe4   :  { %4272 = vmatpush1.msra.mxu0 %v4038_v22  ;;  %4190 = vmatprep.subr.mxu1 %v9265_v13 }
  0xe5   :  { %4074 = vmatprep.mubr.f32.mxu1 %v9890_v1  ;;  %4305 = vmatprep.mubr.f32.mxu0 %v9890_v1 }
  0xe6   :  { %4076 = vmatmul.mubr.f32.vlgmr.msra.gmra.mxu1 %v9262_v12 }
  0xe7   :  { %4192 = vmatpush1.msra.mxu1 %v3954_v20  ;;  %4225 = vmatprep.mubr.f32.mxu1 %v9890_v1 }
  0xe8   :  { %4344 = vmatprep.subr.mxu1 %v9265_v13  ;;  %4307 = vmatmul.mubr.f32.vlgmr.msra.gmra.mxu0 %v9262_v12 }
  0xe9   :  { %4520 = vmatprep.mubr.f32.mxu0 %v9890_v1 }
  0xea   :  { %4229 = vmatmul.mubr.f32.vlgmr.msra.gmra.mxu1 %v3991_v24 }
  0xeb   :  { %4346 = vmatpush1.msra.mxu1 %v3954_v20  ;;  %4379 = vmatprep.mubr.f32.mxu1 %v9890_v1 }
  0xee   :  { %4381 = vmatmul.mubr.f32.vlgmr.msra.gmra.mxu1 %v9262_v12 }
  0xef   :  { %4606 = vmatprep.mubr.f32.mxu1 %v9890_v1 }
 0x13e   :  { %v161_v34 = vpop.f32.mrf.mxu0 }
 0x140   :  { %v163_v35 = vpop.f32.mrf.mxu0 }
 0x142   :  { %v320_v36 = vpop.f32.mrf.mxu0 }
 0x144   :  { %v322_v37 = vpop.f32.mrf.mxu0 }
 0x146   :  { %v243_v38 = vpop.f32.mrf.mxu1 }
 0x147   :  { %v244_v41 = vadd.f32 %v243_v38, %v161_v34  ;;  %v474_v29 = vpop.f32.mrf.mxu0 }
 0x148   :  { %v245_v40 = vpop.f32.mrf.mxu1 }
 0x149   :  { %v321_v42 = vadd.f32 %v320_v36, %v244_v41  ;;  %v246_v43 = vadd.f32 %v245_v40, %v163_v35  ;;  %v476_v46 = vpop.f32.mrf.mxu0 }
 0x14a   :  { %v396_v18 = vpop.f32.mrf.mxu1 }
 0x14b   :  { %v323_v45 = vadd.f32 %v322_v37, %v246_v43  ;;  %v397_v47 = vadd.f32 %v396_v18, %v321_v42  ;;  %v629_v48 = vpop.f32.mrf.mxu0 }
 0x14c   :  { %v398_v49 = vpop.f32.mrf.mxu1 }
 0x14d   :  { %v475_v50 = vadd.f32 %v474_v29, %v397_v47  ;;  %v399_v51 = vadd.f32 %v398_v49, %v323_v45  ;;  %v631_v39 = vpop.f32.mrf.mxu0 }
 0x14e   :  { %v548_v52 = vpop.f32.mrf.mxu1 }
 0x14f   :  { %v477_v53 = vadd.f32 %v476_v46, %v399_v51  ;;  %v549_v2 = vadd.f32 %v548_v52, %v475_v50  ;;  %v788_v54 = vpop.f32.mrf.mxu0 }
 0x150   :  { %v550_v56 = vpop.f32.mrf.mxu1 }
 0x151   :  { %v630_v58 = vadd.f32 %v629_v48, %v549_v2  ;;  %v551_v59 = vadd.f32 %v550_v56, %v477_v53  ;;  %v790_v60 = vpop.f32.mrf.mxu0 }
 0x152   :  { %v711_v0 = vpop.f32.mrf.mxu1 }
 0x153   :  { %v632_v61 = vadd.f32 %v631_v39, %v551_v59  ;;  %v712_v62 = vadd.f32 %v711_v0, %v630_v58  ;;  %v942_v3 = vpop.f32.mrf.mxu0 }
 0x154   :  { %v713_v57 = vpop.f32.mrf.mxu1 }
 0x155   :  { %v789_v4 = vadd.f32 %v788_v54, %v712_v62  ;;  %v714_v5 = vadd.f32 %v713_v57, %v632_v61  ;;  %v944_v7 = vpop.f32.mrf.mxu0 }
 0x156   :  { %v864_v9 = vpop.f32.mrf.mxu1 }
 0x157   :  { %v791_v10 = vadd.f32 %v790_v60, %v714_v5  ;;  %v865_v12 = vadd.f32 %v864_v9, %v789_v4  ;;  %v1110_v13 = vpop.f32.mrf.mxu0 }
 0x158   :  { %v866_v14 = vpop.f32.mrf.mxu1 }
 0x159   :  { %v943_v15 = vadd.f32 %v942_v3, %v865_v12  ;;  %v867_v63 = vadd.f32 %v866_v14, %v791_v10  ;;  %v9320_v16 = vpop.f32.mrf.mxu0 }
 0x15a   :  { %v1016_v17 = vpop.f32.mrf.mxu1 }
 0x15b   :  { %v945_v8 = vadd.f32 %v944_v7, %v867_v63  ;;  %v1017_v11 = vadd.f32 %v1016_v17, %v943_v15  ;;  %v1269_v19 = vpop.f32.mrf.mxu0 }
 0x15c   :  { %v1018_v20 = vpop.f32.mrf.mxu1 }
 0x15d   :  { %v9322_v24 = vadd.f32 %v1018_v20, %v945_v8  ;;  %v9324_v25 = vpop.f32.mrf.mxu0 }
 0x15e   :  { %v1192_v26 = vpop.f32.mrf.mxu1 }
 0x15f   :  { %v1193_v6 = vadd.f32 %v1192_v26, %v1110_v13  ;;  %v1423_v28 = vpop.f32.mrf.mxu0 }
 0x160   :  { %v1194_v30 = vpop.f32.mrf.mxu1 }
 0x161   :  { %v1270_v22 = vadd.f32 %v1269_v19, %v1193_v6  ;;  %v9326_v27 = vpop.f32.mrf.mxu0 }
 0x162   :  { %v1345_v31 = vpop.f32.mrf.mxu1 }
 0x163   :  { %v1346_v32 = vadd.f32 %v1345_v31, %v1270_v22  ;;  %v1593_v33 = vpop.f32.mrf.mxu0 }
 0x164   :  { %v9328_v34 = vpop.f32.mrf.mxu1 }
 0x165   :  { %v1424_v35 = vadd.f32 %v1423_v28, %v1346_v32  ;;  %v1595_v36 = vpop.f32.mrf.mxu0  ;;  %v1195_v28 = vadd.f32 %v1194_v30, %v9320_v16 }
 0x166   :  { %v1497_v37 = vpop.f32.mrf.mxu1 }
 0x167   :  { %v1498_v38 = vadd.f32 %v1497_v37, %v1424_v35  ;;  %v1752_v41 = vpop.f32.mrf.mxu0  ;;  %v1272_v1 = vadd.f32 %v9324_v25, %v1195_v28 }
 0x168   :  { %v9330_v29 = vpop.f32.mrf.mxu1 }
 0x169   :  { %v9332_v40 = vadd.f32 %v1498_v38, %v1017_v11  ;;  %v1754_v42 = vpop.f32.mrf.mxu0  ;;  %v1348_v30 = vadd.f32 %v9328_v34, %v1272_v1 }
 0x16a   :  { %v1675_v43 = vpop.f32.mrf.mxu1 }
 0x16b   :  { %9912 = vst [vmem:[#allocation6_spill] sm:$0xff] %v9332_v40  ;;  %v9334_v46 = vpop.f32.mrf.mxu0  ;;  %v1676_v32 = vadd.f32 %v1675_v43, %v1593_v33 }
 0x16c   :  { %v1677_v18 = vpop.f32.mrf.mxu1 }
 0x16d   :  { %v9336_v45 = vpop.f32.mrf.mxu0  ;;  %v1678_v35 = vadd.f32 %v1677_v18, %v1595_v36 }
 0x16e   :  { %v1828_v47 = vpop.f32.mrf.mxu1 }
 0x16f   :  { %v2065_v48 = vpop.f32.mrf.mxu0 }
 0x170   :  { %v1830_v49 = vpop.f32.mrf.mxu1 }
 0x171   :  { %v2067_v50 = vpop.f32.mrf.mxu0 }
 0x172   :  { %v9338_v51 = vpop.f32.mrf.mxu1 }
 0x173   :  { %v2224_v39 = vpop.f32.mrf.mxu0 }
 0x174   :  { %v9340_v52 = vpop.f32.mrf.mxu1 }
 0x175   :  { %v2226_v53 = vpop.f32.mrf.mxu0 }
 0x176   :  { %v2147_v2 = vpop.f32.mrf.mxu1 }
 0x177   :  { %v9342_v54 = vpop.f32.mrf.mxu0  ;;  %v2148_v44 = vadd.f32 %v2147_v2, %v2065_v48 }
 0x178   :  { %v2149_v56 = vpop.f32.mrf.mxu1 }
 0x179   :  { %v9344_v58 = vpop.f32.mrf.mxu0  ;;  %v2150_v55 = vadd.f32 %v2149_v56, %v2067_v50  ;;  %v2225_v33 = vadd.f32 %v2224_v39, %v2148_v44 }
 0x17a   :  { %v2300_v59 = vpop.f32.mrf.mxu1 }
 0x17b   :  { %v2548_v60 = vpop.f32.mrf.mxu0  ;;  %v2227_v36 = vadd.f32 %v2226_v53, %v2150_v55 }
 0x17c   :  { %v2302_v0 = vpop.f32.mrf.mxu1 }
 0x17d   :  { %v2550_v61 = vpop.f32.mrf.mxu0 }
 0x17e   :  { %v9346_v62 = vpop.f32.mrf.mxu1 }
 0x17f   :  { %v2707_v3 = vpop.f32.mrf.mxu0 }
 0x180   :  { %v9348_v57 = vpop.f32.mrf.mxu1 }
 0x181   :  { %9913 = vst [vmem:[#allocation7_spill] sm:$0xff] %v9348_v57  ;;  %v2709_v4 = vpop.f32.mrf.mxu0 }
 0x182   :  { %v2630_v5 = vpop.f32.mrf.mxu1 }
 0x183   :  { %v9350_v7 = vpop.f32.mrf.mxu0  ;;  %v2631_v40 = vadd.f32 %v2630_v5, %v2548_v60  ;;  %v2301_v5 = vadd.f32 %v2300_v59, %v2225_v33 }
 0x184   :  { %v2632_v9 = vpop.f32.mrf.mxu1 }
 0x185   :  { %v9352_v10 = vpop.f32.mrf.mxu0  ;;  %v2708_v2 = vadd.f32 %v2707_v3, %v2631_v40 }
 0x186   :  { %v2783_v12 = vpop.f32.mrf.mxu1 }
 0x187   :  { %v3031_v13 = vpop.f32.mrf.mxu0 }
 0x188   :  { %v2785_v14 = vpop.f32.mrf.mxu1 }
 0x189   :  { %v3033_v15 = vpop.f32.mrf.mxu0 }
 0x18a   :  { %v9354_v63 = vpop.f32.mrf.mxu1 }
 0x18b   :  { %9914 = vst [vmem:[#allocation8_spill] sm:$0xff] %v9354_v63  ;;  %v3190_v17 = vpop.f32.mrf.mxu0  ;;  %v1755_v63 = vadd.f32 %v1754_v42, %v1678_v35  ;;  %v9921_v35 = vld [vmem:[#allocation6_spill] sm:$0xff] }
 0x18c   :  { %v9356_v8 = vpop.f32.mrf.mxu1 }
 0x18d   :  { %9915 = vst [vmem:[#allocation9_spill] sm:$0xff] %v9356_v8  ;;  %v3192_v11 = vpop.f32.mrf.mxu0  ;;  %v1753_v8 = vadd.f32 %v1752_v41, %v1676_v32  ;;  %v1831_v50 = vadd.f32 %v1830_v49, %v1755_v63 }
 0x18e   :  { %v3113_v19 = vpop.f32.mrf.mxu1 }
 0x18f   :  { %v9358_v20 = vpop.f32.mrf.mxu0  ;;  %v3114_v18 = vadd.f32 %v3113_v19, %v3031_v13  ;;  %v1829_v48 = vadd.f32 %v1828_v47, %v1753_v8  ;;  %v1909_v39 = vadd.f32 %v9336_v45, %v1831_v50  ;;  %v2784_v47 = vadd.f32 %v2783_v12, %v2708_v2 }
 0x190   :  { %9916 = vst [vmem:[#allocation10_spill] sm:$0xff] %v9358_v20  ;;  %v3115_v26 = vpop.f32.mrf.mxu1  ;;  %v2633_v20 = vadd.f32 %v2632_v9, %v2550_v61  ;;  %v1426_v61 = vadd.f32 %v9326_v27, %v1348_v30  ;;  %v2303_v9 = vadd.f32 %v2302_v0, %v2227_v36  ;;  %v2379_v27 = vadd.f32 %v9342_v54, %v2301_v5 }
 0x191   :  { %v9360_v6 = vpop.f32.mrf.mxu0  ;;  %v3116_v57 = vadd.f32 %v3115_v26, %v3033_v15  ;;  %v3191_v1 = vadd.f32 %v3190_v17, %v3114_v18  ;;  %v1907_v34 = vadd.f32 %v9334_v46, %v1829_v48  ;;  %v1983_v45 = vadd.f32 %v9340_v52, %v1909_v39 }
 0x192   :  { %9917 = vst [vmem:[#allocation11_spill] sm:$0xff] %v9360_v6  ;;  %v3266_v22 = vpop.f32.mrf.mxu1  ;;  %v2710_v56 = vadd.f32 %v2709_v4, %v2633_v20  ;;  %v1500_v13 = vadd.f32 %v9330_v29, %v1426_v61  ;;  %v2381_v59 = vadd.f32 %v9344_v58, %v2303_v9  ;;  %v2862_v12 = vadd.f32 %v9350_v7, %v2784_v47  ;;  %v9918_v58 = vld [vmem:[#allocation7_spill] sm:$0xff] }
 0x193   :  { %v3512_v31 = vpop.f32.mrf.mxu0  ;;  %v3193_v44 = vadd.f32 %v3192_v11, %v3116_v57  ;;  %v3267_v15 = vadd.f32 %v3266_v22, %v3191_v1  ;;  %v1981_v46 = vadd.f32 %v9338_v51, %v1907_v34  ;;  %v2453_v54 = vadd.f32 %v9346_v62, %v2379_v27 }
 0x194   :  { %v3268_v37 = vpop.f32.mrf.mxu1  ;;  %v2786_v49 = vadd.f32 %v2785_v14, %v2710_v56  ;;  %v1503_v29 = vadd.f32 %v1500_v13, %v9322_v24  ;;  %v2455_v11 = vadd.f32 %v9918_v58, %v2381_v59  ;;  %v8838_v27 = vmov 0   ;;  %v4406_v59 = vld [vmem:[%s9884_s2] sm:$0xff] }
 0x195   :  { %v3514_v38 = vpop.f32.mrf.mxu0  ;;  %v3269_v57 = vadd.f32 %v3268_v37, %v3193_v44  ;;  %v1985_v7 = vadd.f32 %v1981_v46, %v9921_v35  ;;  %8821 = vset.pattern.permute.xlu0 %v8838_v27  ;;  %8822 = vset.pattern.permute.xlu1 %v8838_v27 }
 0x196   :  { %v9364_v23 = vpop.f32.mrf.mxu1  ;;  %v1986_v37 = vadd.f32 %v1983_v45, %v1503_v29 }
 0x197   :  { %v3671_v21 = vpop.f32.mrf.mxu0  ;;  %v9919_v26 = vld [vmem:[#allocation10_spill] sm:$0xff]  ;;  %v2457_v18 = vadd.f32 %v2453_v54, %v1985_v7 }
 0x198   :  { %v9366_v6 = vpop.f32.mrf.mxu1  ;;  %v3345_v22 = vadd.f32 %v9919_v26, %v3267_v15  ;;  %v2458_v48 = vadd.f32 %v2455_v11, %v1986_v37  ;;  %v8803_v37 = vld [vmem:[%s9886_s4 + $0x8] sm:$0xff] }
 0x199   :  { %v3673_v16 = vpop.f32.mrf.mxu0  ;;  %v9920_v51 = vld [vmem:[#allocation11_spill] sm:$0xff] }
 0x19a   :  { %v3594_v43 = vpop.f32.mrf.mxu1  ;;  %v3419_v56 = vadd.f32 %v9364_v23, %v3345_v22 }
 0x19b   :  { %v3825_v25 = vpop.f32.mrf.mxu0  ;;  %v3595_v41 = vadd.f32 %v3594_v43, %v3512_v31  ;;  %v3347_v31 = vadd.f32 %v9920_v51, %v3269_v57 }
 0x19c   :  { %v3596_v28 = vpop.f32.mrf.mxu1 }
 0x19d   :  { %v3597_v42 = vadd.f32 %v3596_v28, %v3514_v38  ;;  %v3827_v60 = vpop.f32.mrf.mxu0  ;;  %v3672_v53 = vadd.f32 %v3671_v21, %v3595_v41  ;;  %v2864_v21 = vadd.f32 %v9352_v10, %v2786_v49  ;;  %v9922_v10 = vld [vmem:[#allocation8_spill] sm:$0xff]  ;;  %v3421_v28 = vadd.f32 %v9366_v6, %v3347_v31 }
 0x19e   :  { %v3747_v32 = vpop.f32.mrf.mxu1  ;;  %v2936_v38 = vadd.f32 %v9922_v10, %v2862_v12  ;;  %v4452_v10 = vsel %vm84_vm0, %v8803_v37, 0 }
 0x19f   :  { %v3995_v55 = vpop.f32.mrf.mxu0  ;;  %v3674_v3 = vadd.f32 %v3673_v16, %v3597_v42  ;;  %v3748_v17 = vadd.f32 %v3747_v32, %v3672_v53  ;;  %v9923_v16 = vld [vmem:[#allocation9_spill] sm:$0xff] }
 0x1a0   :  { %v3749_v40 = vpop.f32.mrf.mxu1  ;;  %v2938_v30 = vadd.f32 %v9923_v16, %v2864_v21  ;;  %v2940_v61 = vadd.f32 %v2936_v38, %v2457_v18  ;;  %v4414_v21 = vld [vmem:[%s9885_s3] sm:$0xff]  ;;  %v9435_v38 = vand.u32 4294901760, %v4452_v10 }
 0x1a1   :  { %v3997_v4 = vpop.f32.mrf.mxu0  ;;  %v3750_v8 = vadd.f32 %v3749_v40, %v3674_v3  ;;  %v3826_v24 = vadd.f32 %v3825_v25, %v3748_v17 }
 0x1a2   :  { %v3899_v0 = vpop.f32.mrf.mxu1  ;;  %v2941_v5 = vadd.f32 %v2938_v30, %v2458_v48  ;;  %v3423_v34 = vadd.f32 %v3419_v56, %v2940_v61  ;;  %v9438_v16 = vsub.f32 %v4452_v10, %v9435_v38  ;;  %v4440_v30 = vld [vmem:[%s9886_s4] sm:$0xff] }
 0x1a3   :  { %v4154_v63 = vpop.f32.mrf.mxu0  ;;  %v3828_v36 = vadd.f32 %v3827_v60, %v3750_v8  ;;  %v3900_v32 = vadd.f32 %v3899_v0, %v3826_v24 }
 0x1a4   :  { %v3901_v14 = vpop.f32.mrf.mxu1  ;;  %v3424_v39 = vadd.f32 %v3421_v28, %v2941_v5 }
 0x1a5   :  { %v4156_v20 = vpop.f32.mrf.mxu0  ;;  %v3902_v1 = vadd.f32 %v3901_v14, %v3828_v36  ;;  %v3904_v53 = vadd.f32 %v3900_v32, %v3423_v34  ;;  %v4920_v36 = vsel %vm84_vm0, %v4440_v30, 0  ;;  %v8804_v32 = vld [vmem:[%s9886_s4 + $0x10] sm:$0xff] }
 0x1a6   :  { %v4077_v19 = vpop.f32.mrf.mxu1  ;;  %v9451_v48 = vand.u32 4294901760, %v4920_v36 }
 0x1a7   :  { %v4078_v52 = vadd.f32 %v4077_v19, %v3995_v55  ;;  %v3905_v23 = vadd.f32 %v3902_v1, %v3424_v39  ;;  %v9925_v39 = vmov 0.0  }
 0x1a8   :  { %v4079_v33 = vpop.f32.mrf.mxu1  ;;  %v4308_v2 = vpop.f32.mrf.mxu0  ;;  %v9456_v61 = vsub.f32 %v4920_v36, %v9451_v48 }
 0x1a9   :  { %v4155_v62 = vadd.f32 %v4154_v63, %v4078_v52  ;;  %v4080_v43 = vadd.f32 %v4079_v33, %v3997_v4  ;;  %v4523_v33 = vand.u32 4294901760, %v9438_v16 }
 0x1aa   :  { %v4230_v50 = vpop.f32.mrf.mxu1  ;;  %v4310_v60 = vpop.f32.mrf.mxu0 }
 0x1ab   :  { %v4157_v41 = vadd.f32 %v4156_v20, %v4080_v43  ;;  %v4231_v42 = vadd.f32 %v4230_v50, %v4155_v62  ;;  %v4524_v18 = vsub.f32 %v9438_v16, %v4523_v33 }
 0x1ac   :  { %v4232_v9 = vpop.f32.mrf.mxu1 }
 0x1ad   :  { %v4309_v44 = vadd.f32 %v4308_v2, %v4231_v42  ;;  %v4233_v25 = vadd.f32 %v4232_v9, %v4157_v41  ;;  %v4525_v41 = vand.u32 4294901760, %v4524_v18 }
 0x1ae   :  { %v4382_v55 = vpop.f32.mrf.mxu1 }
 0x1af   :  { %v4311_v47 = vadd.f32 %v4310_v60, %v4233_v25  ;;  %v4383_v49 = vadd.f32 %v4382_v55, %v4309_v44 }
 0x1b0   :  { %v4384_v40 = vpop.f32.mrf.mxu1 }
 0x1b1   :  { %v4385_v3 = vadd.f32 %v4384_v40, %v4311_v47  ;;  %v4387_v6 = vadd.f32 %v4383_v49, %v3904_v53  ;;  %v4991_v47 = vand.u32 4294901760, %v9456_v61  ;;  %v5400_v49 = vsel %vm84_vm0, %v8804_v32, 0 }
 0x1b2   :  { %v9477_v27 = vand.u32 4294901760, %v5400_v49 }
 0x1b3   :  { %v4388_v4 = vadd.f32 %v4385_v3, %v3905_v23 }
 0x1b5   :  { %v4389_v13 = vadd.f32 %v4388_v4, %v4387_v6 }
 0x1b7   :  { %4390 = vadd.xlane.f32.xlu0 %v4389_v13 }
 0x1cd   :  { %4409 = vperm.xlu0 %8821, %v4406_v59  }
 0x240   :  { %v4391_v0 = vpop.xlane.xlu0 %4390 }
 0x241   :  { %v4393_v15 = vmul.f32 0.00390625, %v4391_v0 }
 0x243   :  { %v4394_v57 = vsub.f32 %v4387_v6, %v4393_v15  ;;  %v4395_v63 = vsub.f32 %v4388_v4, %v4393_v15  ;;  %v4992_v15 = vsub.f32 %v9456_v61, %v4991_v47 }
 0x245   :  { %v4396_v46 = vmul.f32 %v4394_v57, %v4394_v57  ;;  %v4397_v45 = vmul.f32 %v4395_v63, %v4395_v63 }
 0x247   :  { %v4398_v12 = vadd.f32 %v4397_v45, %v4396_v46 }
 0x248   :  { %v4410_v54 = vpop.permute.xlu0 %4409 }
 0x249   :  { %4399 = vadd.xlane.f32.xlu1 %v4398_v12 }
 0x25a   :  { %4417 = vperm.xlu1 %8822, %v4414_v21  }
 0x2d2   :  { %v4400_v14 = vpop.xlane.xlu1 %4399 }
 0x2d3   :  { %v4401_v17 = vmul.f32 0.00390625, %v4400_v14  ;;  %v9493_v14 = vsub.f32 %v5400_v49, %v9477_v27 }
 0x2d5   :  { %v4402_v8 = vadd.f32 1e-05, %v4401_v17  ;;  %v4993_v17 = vand.u32 4294901760, %v4992_v15 }
 0x2d6   :  { %v4418_v19 = vpop.permute.xlu1 %4417 }
 0x2d7   :  { %8823 = vrsqrt.f32 %v4402_v8 }
 0x2e4   :  { %v8824_v29 = vpop.eup %8823 }
 0x2e5   :  { %v4404_v58 = vmul.f32 %v8824_v29, %v4394_v57  ;;  %v4405_v11 = vmul.f32 %v8824_v29, %v4395_v63 }
 0x2e7   :  { %v4412_v20 = vmul.f32 %v4410_v54, %v4404_v58  ;;  %v4413_v26 = vmul.f32 %v4410_v54, %v4405_v11 }
 0x2e9   :  { %v4420_v22 = vadd.f32 %v4418_v19, %v4412_v20  ;;  %v4421_v51 = vadd.f32 %v4418_v19, %v4413_v26  ;;  %v8805_v19 = vld [vmem:[%s9886_s4 + $0x18] sm:$0xff] }
 0x2ea   :  { %v5882_v30 = vsel %vm84_vm0, %v8805_v19, 0 }
 0x2eb   :  { %vm4422_vm13 = vcmp.gt.f32.partialorder %v4420_v22, 0.0  ;;  %v4424_v31 = vmul.f32 0.01, %v4420_v22  ;;  %v4425_v52 = vmul.f32 0.01, %v4421_v51  ;;  %vm4423_vm14 = vcmp.gt.f32.partialorder %v4421_v51, 0.0 }
 0x2ed   :  { %v9395_v35 = vsel %vm4422_vm13, %v4420_v22, %v4424_v31  ;;  %v9401_v7 = vsel %vm4423_vm14, %v4421_v51, %v4425_v52  ;;  %v5471_v51 = vand.u32 4294901760, %v9493_v14 }
 0x2ee   :  { %5869 = vrot.lane.b32.xlu0 %v9395_v35, %s8833_s8  ;;  %4441 = vrot.lane.b32.xlu1 %v9395_v35, %s8830_s26  ;;  %v9588_v15 = vand.u32 4294901760, %v9395_v35 }
 0x2f2   :  { %6825 = vrot.lane.b32.xlu0 %v9401_v7, %s8834_s9  ;;  %4443 = vrot.lane.b32.xlu1 %v9401_v7, %s8830_s26 }
 0x2f6   :  { %7307 = vrot.lane.b32.xlu0 %v9401_v7, %s8835_s10  ;;  %4430 = vrot.lane.b32.xlu1 %v9395_v35, %s8831_s27 }
 0x2fa   :  { %7789 = vrot.lane.b32.xlu0 %v9401_v7, %s8836_s11  ;;  %4432 = vrot.lane.b32.xlu1 %v9401_v7, %s8831_s27 }
 0x2fe   :  { %8269 = vrot.lane.b32.xlu0 %v9401_v7, %s8837_s12  ;;  %5387 = vrot.lane.b32.xlu1 %v9395_v35, %s8832_s30 }
 0x302   :  { %5389 = vrot.lane.b32.xlu1 %v9401_v7, %s8832_s30 }
 0x306   :  { %5871 = vrot.lane.b32.xlu1 %v9401_v7, %s8833_s8 }
 0x30a   :  { %6823 = vrot.lane.b32.xlu1 %v9395_v35, %s8834_s9 }
 0x30e   :  { %7305 = vrot.lane.b32.xlu1 %v9395_v35, %s8835_s10 }
 0x312   :  { %7787 = vrot.lane.b32.xlu1 %v9395_v35, %s8836_s11 }
 0x316   :  { %8267 = vrot.lane.b32.xlu1 %v9395_v35, %s8837_s12 }
 0x360   :  { %v4442_v24 = vpop.permute.xlu1 %4441  ;;  %v5870_v52 = vpop.permute.xlu0 %5869 }
 0x361   :  { %v4448_v62 = vsel %vm77_vm1, 0.0, %v4442_v24 }
 0x362   :  { %v9446_v43 = vand.u32 4294901760, %v4448_v62 }
 0x364   :  { %v4569_v50 = vsub.f32 %v4448_v62, %v9446_v43  ;;  %v4444_v2 = vpop.permute.xlu1 %4443  ;;  %v5472_v62 = vsub.f32 %v9493_v14, %v5471_v51 }
 0x365   :  { %v4445_v56 = vsel %vm77_vm1, %v4442_v24, %v4444_v2  ;;  %v9530_v2 = vand.u32 4294901760, %v5882_v30 }
 0x366   :  { %v4484_v28 = vand.u32 4294901760, %v4445_v56  ;;  %v4570_v42 = vand.u32 4294901760, %v4569_v50 }
 0x368   :  { %v4563_v5 = vsub.f32 %v4445_v56, %v4484_v28  ;;  %4485 = vmatprep.subr.mxu0 %v4484_v28  ;;  %v4431_v9 = vpop.permute.xlu1 %4430  ;;  %v4571_v55 = vsub.f32 %v4569_v50, %v4570_v42 }
 0x369   :  { %v4437_v1 = vsel %vm65_vm2, 0.0, %v4431_v9  ;;  %4487 = vmatpush1.msra.mxu0 %v9446_v43 }
 0x36a   :  { %v4438_v25 = vsel %vm8945_vm3, %v4437_v1, 0.0  ;;  %4526 = vmatmul.mubr.f32.vlgmr.msra.gmra.mxu0 %v4525_v41  ;;  %4646 = vmatprep.subr.mxu0 %v4563_v5  ;;  %v4564_v60 = vand.u32 4294901760, %v4563_v5  ;;  %v4572_v0 = vand.u32 4294901760, %v4571_v55  ;;  %v8806_v1 = vld [vmem:[%s9886_s4 + $0x20] sm:$0xff] }
 0x36b   :  { %v9465_v34 = vand.u32 4294901760, %v4438_v25  ;;  %4649 = vmatpush1.msra.mxu0 %v4569_v50  ;;  %4682 = vmatprep.mubr.f32.mxu0 %v9925_v39  ;;  %v6354_v49 = vsel %vm84_vm0, %v8806_v1, 0 }
 0x36c   :  { %4800 = vmatprep.subr.mxu0 %v4564_v60  ;;  %v4433_v40 = vpop.permute.xlu1 %4432  ;;  %v4565_v53 = vsub.f32 %v4563_v5, %v4564_v60  ;;  %v9544_v5 = vsub.f32 %v5882_v30, %v9530_v2  ;;  %v8808_v30 = vld [vmem:[%s9886_s4 + $0x30] sm:$0xff] }
 0x36d   :  { %v9471_v23 = vsub.f32 %v4438_v25, %v9465_v34  ;;  %v4434_v3 = vsel %vm65_vm2, %v4431_v9, %v4433_v40 }
 0x36e   :  { %v4439_v4 = vsel %vm8950_vm4, %v4434_v3, 0.0  ;;  %4685 = vmatmul.mubr.f32.vlgmr.msra.gmra.mxu0 %v9438_v16  ;;  %v4566_v13 = vand.u32 4294901760, %v4565_v53  ;;  %v5953_v55 = vand.u32 4294901760, %v9544_v5  ;;  %v9577_v3 = vand.u32 4294901760, %v9401_v7 }
 0x36f   :  { %v9479_v59 = vand.u32 4294901760, %v4439_v4  ;;  %4804 = vmatpush1.msra.mxu0 %v4570_v42  ;;  %4837 = vmatprep.mubr.f32.mxu0 %v9925_v39  ;;  %v5038_v63 = vand.u32 4294901760, %v9471_v23  ;;  %v5473_v42 = vand.u32 4294901760, %v5472_v62 }
 0x370   :  { %4567 = vmatprep.subr.mxu1 %v4566_v13  ;;  %v5388_v57 = vpop.permute.xlu1 %5387 }
 0x371   :  { %v5031_v46 = vsub.f32 %v4439_v4, %v9479_v59  ;;  %v5394_v45 = vsel %vm1025_vm5, 0.0, %v5388_v57  ;;  %4573 = vmatpush1.msra.mxu1 %v4572_v0  ;;  %4953 = vmatprep.subr.mxu0 %v9479_v59  ;;  %v5039_v11 = vsub.f32 %v9471_v23, %v5038_v63 }
 0x372   :  { %v5395_v21 = vsel %vm8989_vm7, %v5394_v45, 0.0  ;;  %4608 = vmatmul.mubr.f32.vlgmr.msra.gmra.mxu1 %v9435_v38  ;;  %4722 = vmatprep.subr.mxu1 %v4484_v28 }
 0x373   :  { %4839 = vmatmul.mubr.f32.vlgmr.msra.gmra.mxu0 %v9435_v38  ;;  %4724 = vmatpush1.msra.mxu1 %v9446_v43  ;;  %v5032_v8 = vand.u32 4294901760, %v5031_v46  ;;  %v9498_v54 = vand.u32 4294901760, %v5395_v21  ;;  %v5040_v36 = vand.u32 4294901760, %v5039_v11 }
 0x374   :  { %4955 = vmatpush1.msra.mxu0 %v9465_v34  ;;  %4876 = vmatprep.subr.mxu1 %v4484_v28  ;;  %v5390_v29 = vpop.permute.xlu1 %5389 }
 0x375   :  { %5114 = vmatprep.subr.mxu0 %v5031_v46  ;;  %v5391_v58 = vsel %vm1025_vm5, %v5388_v57, %v5390_v29  ;;  %4757 = vmatprep.mubr.f32.mxu1 %v9925_v39  ;;  %v5033_v22 = vsub.f32 %v5031_v46, %v5032_v8  ;;  %v5517_v16 = vsub.f32 %v5395_v21, %v9498_v54  ;;  %v8807_v57 = vld [vmem:[%s9886_s4 + $0x28] sm:$0xff] }
 0x376   :  { %v5396_v26 = vsel %vm8974_vm6, %v5391_v58, 0.0  ;;  %4988 = vmatprep.mubr.f32.mxu0 %v9925_v39  ;;  %4761 = vmatmul.mubr.f32.vlgmr.msra.gmra.mxu1 %v4523_v33  ;;  %v6465_v46 = vsub.f32 %v9401_v7, %v9577_v3  ;;  %v6471_v29 = vsub.f32 %v9395_v35, %v9588_v15 }
 0x377   :  { %v9512_v31 = vand.u32 4294901760, %v5396_v26  ;;  %4878 = vmatpush1.msra.mxu1 %v9446_v43  ;;  %4994 = vmatmul.mubr.f32.vlgmr.msra.gmra.mxu0 %v4993_v17  ;;  %v5034_v10 = vand.u32 4294901760, %v5033_v22  ;;  %v5876_v43 = vsel %vm1508_vm8, 0.0, %v5870_v52  ;;  %v5518_v56 = vand.u32 4294901760, %v5517_v16 }
 0x378   :  { %5117 = vmatpush1.msra.mxu0 %v9471_v23  ;;  %v5872_v37 = vpop.permute.xlu1 %5871  ;;  %4911 = vmatprep.mubr.f32.mxu1 %v9925_v39  ;;  %v6466_v7 = vand.u32 4294901760, %v6465_v46  ;;  %v6472_v35 = vand.u32 4294901760, %v6471_v29 }
 0x379   :  { %v5511_v33 = vsub.f32 %v5396_v26, %v9512_v31  ;;  %5268 = vmatprep.subr.mxu0 %v5032_v8  ;;  %v5873_v24 = vsel %vm1508_vm8, %v5870_v52, %v5872_v37  ;;  %5150 = vmatprep.mubr.f32.mxu0 %v9925_v39  ;;  %v5519_v32 = vsub.f32 %v5517_v16, %v5518_v56  ;;  %v6836_v8 = vsel %vm84_vm0, %v8807_v57, 0 }
 0x37a   :  { %5035 = vmatprep.subr.mxu1 %v5034_v10  ;;  %4913 = vmatmul.mubr.f32.vlgmr.msra.gmra.mxu1 %v9435_v38  ;;  %v5878_v18 = vsel %vm8950_vm4, %v5873_v24, 0.0  ;;  %v5877_v38 = vsel %vm8945_vm3, %v5876_v43, 0.0  ;;  %v9614_v19 = vand.u32 4294901760, %v6836_v8  ;;  %v6467_v22 = vsub.f32 %v6465_v46, %v6466_v7 }
 0x37b   :  { %5041 = vmatpush1.msra.mxu1 %v5040_v36  ;;  %5153 = vmatmul.mubr.f32.vlgmr.msra.gmra.mxu0 %v9456_v61  ;;  %v5512_v50 = vand.u32 4294901760, %v5511_v33  ;;  %v9537_v28 = vand.u32 4294901760, %v5878_v18  ;;  %v9548_v9 = vand.u32 4294901760, %v5877_v38  ;;  %v5520_v53 = vand.u32 4294901760, %v5519_v32 }
 0x37c   :  { %5272 = vmatpush1.msra.mxu0 %v5038_v63  ;;  %5190 = vmatprep.subr.mxu1 %v9479_v59  ;;  %v6824_v17 = vpop.permute.xlu1 %6823  ;;  %v6473_v10 = vsub.f32 %v6471_v29, %v6472_v35  ;;  %v7318_v43 = vsel %vm84_vm0, %v8808_v30, 0 }
 0x37d   :  { %5433 = vmatprep.subr.mxu0 %v9512_v31  ;;  %5074 = vmatprep.mubr.f32.mxu1 %v9925_v39  ;;  %v5513_v41 = vsub.f32 %v5511_v33, %v5512_v50  ;;  %v5993_v25 = vsub.f32 %v5878_v18, %v9537_v28  ;;  %v5999_v40 = vsub.f32 %v5877_v38, %v9548_v9 }
 0x37e   :  { %5305 = vmatprep.mubr.f32.mxu0 %v9925_v39  ;;  %5076 = vmatmul.mubr.f32.vlgmr.msra.gmra.mxu1 %v9451_v48 }
 0x37f   :  { %5192 = vmatpush1.msra.mxu1 %v9465_v34  ;;  %5307 = vmatmul.mubr.f32.vlgmr.msra.gmra.mxu0 %v9451_v48  ;;  %v5514_v60 = vand.u32 4294901760, %v5513_v41  ;;  %v5994_v61 = vand.u32 4294901760, %v5993_v25  ;;  %v6000_v23 = vand.u32 4294901760, %v5999_v40 }
 0x380   :  { %5435 = vmatpush1.msra.mxu0 %v9498_v54  ;;  %5344 = vmatprep.subr.mxu1 %v9479_v59  ;;  %v6826_v59 = vpop.permute.xlu0 %6825  ;;  %v7306_v62 = vpop.permute.xlu1 %7305 }
 0x381   :  { %5594 = vmatprep.subr.mxu0 %v5511_v33  ;;  %5225 = vmatprep.mubr.f32.mxu1 %v9925_v39  ;;  %v6001_v0 = vsub.f32 %v5999_v40, %v6000_v23  ;;  %v6830_v21 = vsel %vm2463_vm9, %v6826_v59, 0.0  ;;  %v6827_v58 = vsel %vm2463_vm9, %v6824_v17, %v6826_v59  ;;  %v6468_v33 = vand.u32 4294901760, %v6467_v22 }
 0x382   :  { %5468 = vmatprep.mubr.f32.mxu0 %v9925_v39  ;;  %5229 = vmatmul.mubr.f32.vlgmr.msra.gmra.mxu1 %v4991_v47  ;;  %v9569_v47 = vand.u32 4294901760, %v6354_v49  ;;  %v6831_v26 = vsel %vm8989_vm7, %v6827_v58, 0.0 }
 0x383   :  { %5346 = vmatpush1.msra.mxu1 %v9465_v34  ;;  %5474 = vmatmul.mubr.f32.vlgmr.msra.gmra.mxu0 %v5473_v42  ;;  %v5954_v34 = vsub.f32 %v9544_v5, %v5953_v55  ;;  %v9632_v37 = vand.u32 4294901760, %v6831_v26  ;;  %v9657_v42 = vand.u32 4294901760, %v7318_v43 }
 0x384   :  { %5597 = vmatpush1.msra.mxu0 %v5517_v16  ;;  %5515 = vmatprep.subr.mxu1 %v5514_v60  ;;  %v9582_v13 = vsub.f32 %v6354_v49, %v9569_v47  ;;  %v7308_v52 = vpop.permute.xlu0 %7307  ;;  %v8809_v60 = vld [vmem:[%s9886_s4 + $0x38] sm:$0xff] }
 0x385   :  { %5748 = vmatprep.subr.mxu0 %v5512_v50  ;;  %5379 = vmatprep.mubr.f32.mxu1 %v9925_v39  ;;  %v5955_v4 = vand.u32 4294901760, %v5954_v34  ;;  %v7312_v36 = vsel %vm2946_vm10, %v7308_v52, 0.0  ;;  %v6953_v18 = vsub.f32 %v6831_v26, %v9632_v37  ;;  %v6474_v50 = vand.u32 4294901760, %v6473_v10 }
 0x386   :  { %5630 = vmatprep.mubr.f32.mxu0 %v9925_v39  ;;  %5381 = vmatmul.mubr.f32.vlgmr.msra.gmra.mxu1 %v9451_v48  ;;  %v5995_v48 = vsub.f32 %v5993_v25, %v5994_v61  ;;  %v6425_v45 = vand.u32 4294901760, %v9582_v13  ;;  %v7314_v38 = vsel %vm8950_vm4, %v7312_v36, 0.0  ;;  %v9671_v1 = vsub.f32 %v7318_v43, %v9657_v42 }
 0x387   :  { %5521 = vmatpush1.msra.mxu1 %v5520_v53  ;;  %5633 = vmatmul.mubr.f32.vlgmr.msra.gmra.mxu0 %v9493_v14  ;;  %v6002_v14 = vand.u32 4294901760, %v6001_v0  ;;  %v9662_v6 = vand.u32 4294901760, %v7314_v38 }
 0x388   :  { %5752 = vmatpush1.msra.mxu0 %v5518_v56  ;;  %5670 = vmatprep.subr.mxu1 %v9512_v31  ;;  %v5996_v63 = vand.u32 4294901760, %v5995_v48  ;;  %v6426_v11 = vsub.f32 %v9582_v13, %v6425_v45  ;;  %v7790_v53 = vpop.permute.xlu0 %7789 }
 0x389   :  { %5915 = vmatprep.subr.mxu0 %v9537_v28  ;;  %5554 = vmatprep.mubr.f32.mxu1 %v9925_v39 }
 0x38a   :  { %5785 = vmatprep.mubr.f32.mxu0 %v9925_v39  ;;  %5556 = vmatmul.mubr.f32.vlgmr.msra.gmra.mxu1 %v9477_v27 }
 0x38b   :  { %5672 = vmatpush1.msra.mxu1 %v9498_v54  ;;  %5787 = vmatmul.mubr.f32.vlgmr.msra.gmra.mxu0 %v9477_v27 }
 0x38c   :  { %5917 = vmatpush1.msra.mxu0 %v9548_v9  ;;  %5824 = vmatprep.subr.mxu1 %v9512_v31  ;;  %v9628_v31 = vsub.f32 %v6836_v8, %v9614_v19  ;;  %v8810_v8 = vld [vmem:[%s9886_s4 + $0x40] sm:$0xff] }
 0x38d   :  { %6076 = vmatprep.subr.mxu0 %v5993_v25  ;;  %5705 = vmatprep.mubr.f32.mxu1 %v9925_v39 }
 0x38e   :  { %5950 = vmatprep.mubr.f32.mxu0 %v9925_v39  ;;  %5709 = vmatmul.mubr.f32.vlgmr.msra.gmra.mxu1 %v5471_v51  ;;  %v6427_v51 = vand.u32 4294901760, %v6426_v11  ;;  %v6907_v24 = vand.u32 4294901760, %v9628_v31  ;;  %v8280_v11 = vsel %vm84_vm0, %v8810_v8, 0 }
 0x38f   :  { %5826 = vmatpush1.msra.mxu1 %v9498_v54  ;;  %5956 = vmatmul.mubr.f32.vlgmr.msra.gmra.mxu0 %v5955_v4  ;;  %v6832_v54 = vsel %vm8974_vm6, %v6830_v21, 0.0  ;;  %v7788_v4 = vpop.permute.xlu1 %7787 }
 0x390   :  { %6079 = vmatpush1.msra.mxu0 %v5999_v40  ;;  %5997 = vmatprep.subr.mxu1 %v5996_v63  ;;  %v6908_v41 = vsub.f32 %v9628_v31, %v6907_v24  ;;  %v7389_v40 = vand.u32 4294901760, %v9671_v1 }
 0x391   :  { %6230 = vmatprep.subr.mxu0 %v5994_v61  ;;  %5859 = vmatprep.mubr.f32.mxu1 %v9925_v39  ;;  %v7798_v61 = vsel %vm84_vm0, %v8809_v60, 0 }
 0x392   :  { %6112 = vmatprep.mubr.f32.mxu0 %v9925_v39  ;;  %5861 = vmatmul.mubr.f32.vlgmr.msra.gmra.mxu1 %v9477_v27  ;;  %v9619_v27 = vand.u32 4294901760, %v6832_v54  ;;  %v6909_v32 = vand.u32 4294901760, %v6908_v41  ;;  %v9697_v59 = vand.u32 4294901760, %v7798_v61 }
 0x393   :  { %6003 = vmatpush1.msra.mxu1 %v6002_v14  ;;  %6115 = vmatmul.mubr.f32.vlgmr.msra.gmra.mxu0 %v9544_v5  ;;  %v6954_v5 = vand.u32 4294901760, %v6953_v18  ;;  %v8268_v58 = vpop.permute.xlu1 %8267 }
 0x394   :  { %6234 = vmatpush1.msra.mxu0 %v6000_v23  ;;  %6152 = vmatprep.subr.mxu1 %v9537_v28  ;;  %v6947_v16 = vsub.f32 %v6832_v54, %v9619_v27 }
 0x395   :  { %6387 = vmatprep.subr.mxu0 %v9577_v3  ;;  %6036 = vmatprep.mubr.f32.mxu1 %v9925_v39  ;;  %v6955_v44 = vsub.f32 %v6953_v18, %v6954_v5 }
 0x396   :  { %6267 = vmatprep.mubr.f32.mxu0 %v9925_v39  ;;  %6038 = vmatmul.mubr.f32.vlgmr.msra.gmra.mxu1 %v9530_v2  ;;  %v6948_v56 = vand.u32 4294901760, %v6947_v16 }
 0x397   :  { %6154 = vmatpush1.msra.mxu1 %v9548_v9  ;;  %6269 = vmatmul.mubr.f32.vlgmr.msra.gmra.mxu0 %v9530_v2  ;;  %v6956_v23 = vand.u32 4294901760, %v6955_v44 }
 0x398   :  { %6389 = vmatpush1.msra.mxu0 %v9588_v15  ;;  %6306 = vmatprep.subr.mxu1 %v9537_v28  ;;  %v7309_v28 = vsel %vm2946_vm10, %v7306_v62, %v7308_v52  ;;  %v9739_v52 = vand.u32 4294901760, %v8280_v11 }
 0x399   :  { %6548 = vmatprep.subr.mxu0 %v6465_v46  ;;  %6187 = vmatprep.mubr.f32.mxu1 %v9925_v39  ;;  %v9710_v46 = vsub.f32 %v7798_v61, %v9697_v59 }
 0x39a   :  { %6422 = vmatprep.mubr.f32.mxu0 %v9925_v39  ;;  %6191 = vmatmul.mubr.f32.vlgmr.msra.gmra.mxu1 %v5953_v55  ;;  %v7429_v55 = vsub.f32 %v7314_v38, %v9662_v6 }
 0x39b   :  { %6308 = vmatpush1.msra.mxu1 %v9548_v9  ;;  %6428 = vmatmul.mubr.f32.vlgmr.msra.gmra.mxu0 %v6427_v51  ;;  %v6949_v9 = vsub.f32 %v6947_v16, %v6948_v56 }
 0x39c   :  { %6551 = vmatpush1.msra.mxu0 %v6471_v29  ;;  %6469 = vmatprep.subr.mxu1 %v6468_v33  ;;  %v7430_v48 = vand.u32 4294901760, %v7429_v55 }
 0x39d   :  { %6702 = vmatprep.subr.mxu0 %v6466_v7  ;;  %6341 = vmatprep.mubr.f32.mxu1 %v9925_v39  ;;  %v6950_v49 = vand.u32 4294901760, %v6949_v9  ;;  %v7869_v7 = vand.u32 4294901760, %v9710_v46 }
 0x39e   :  { %6584 = vmatprep.mubr.f32.mxu0 %v9925_v39  ;;  %6343 = vmatmul.mubr.f32.vlgmr.msra.gmra.mxu1 %v9530_v2  ;;  %v7313_v2 = vsel %vm8945_vm3, %v7309_v28, 0.0  ;;  %v7431_v57 = vsub.f32 %v7429_v55, %v7430_v48 }
 0x39f   :  { %6475 = vmatpush1.msra.mxu1 %v6474_v50  ;;  %6587 = vmatmul.mubr.f32.vlgmr.msra.gmra.mxu0 %v9582_v13  ;;  %v9675_v25 = vand.u32 4294901760, %v7313_v2  ;;  %v7390_v13 = vsub.f32 %v9671_v1, %v7389_v40 }
 0x3a0   :  { %6706 = vmatpush1.msra.mxu0 %v6472_v35  ;;  %6624 = vmatprep.subr.mxu1 %v9577_v3  ;;  %v7432_v29 = vand.u32 4294901760, %v7431_v57 }
 0x3a1   :  { %6869 = vmatprep.subr.mxu0 %v9619_v27  ;;  %6508 = vmatprep.mubr.f32.mxu1 %v9925_v39  ;;  %v7435_v34 = vsub.f32 %v7313_v2, %v9675_v25  ;;  %v7391_v63 = vand.u32 4294901760, %v7390_v13 }
 0x3a2   :  { %6739 = vmatprep.mubr.f32.mxu0 %v9925_v39  ;;  %6510 = vmatmul.mubr.f32.vlgmr.msra.gmra.mxu1 %v9569_v47 }
 0x3a3   :  { %6626 = vmatpush1.msra.mxu1 %v9588_v15  ;;  %6741 = vmatmul.mubr.f32.vlgmr.msra.gmra.mxu0 %v9569_v47  ;;  %v7436_v0 = vand.u32 4294901760, %v7435_v34 }
 0x3a4   :  { %6871 = vmatpush1.msra.mxu0 %v9632_v37  ;;  %6778 = vmatprep.subr.mxu1 %v9577_v3  ;;  %v7794_v3 = vsel %vm3429_vm11, %v7790_v53, 0.0 }
 0x3a5   :  { %7030 = vmatprep.subr.mxu0 %v6947_v16  ;;  %6659 = vmatprep.mubr.f32.mxu1 %v9925_v39  ;;  %v7437_v17 = vsub.f32 %v7435_v34, %v7436_v0  ;;  %v9753_v16 = vsub.f32 %v8280_v11, %v9739_v52 }
 0x3a6   :  { %6904 = vmatprep.mubr.f32.mxu0 %v9925_v39  ;;  %6663 = vmatmul.mubr.f32.vlgmr.msra.gmra.mxu1 %v6425_v45  ;;  %v8270_v45 = vpop.permute.xlu0 %8269 }
 0x3a7   :  { %6780 = vmatpush1.msra.mxu1 %v9588_v15  ;;  %6910 = vmatmul.mubr.f32.vlgmr.msra.gmra.mxu0 %v6909_v32  ;;  %v7791_v15 = vsel %vm3429_vm11, %v7788_v4, %v7790_v53  ;;  %v8274_v54 = vsel %vm3910_vm12, %v8270_v45, 0.0  ;;  %v8271_v51 = vsel %vm3910_vm12, %v8268_v58, %v8270_v45  ;;  %v8351_v62 = vand.u32 4294901760, %v9753_v16 }
 0x3a8   :  { %7033 = vmatpush1.msra.mxu0 %v6953_v18  ;;  %6951 = vmatprep.subr.mxu1 %v6950_v49  ;;  %v9714_v21 = vand.u32 4294901760, %v7791_v15  ;;  %v8276_v22 = vsel %vm8974_vm6, %v8274_v54, 0.0 }
 0x3a9   :  { %7184 = vmatprep.subr.mxu0 %v6948_v56  ;;  %6813 = vmatprep.mubr.f32.mxu1 %v9925_v39  ;;  %v9744_v20 = vand.u32 4294901760, %v8276_v22  ;;  %v8352_v56 = vsub.f32 %v9753_v16, %v8351_v62 }
 0x3aa   :  { %7066 = vmatprep.mubr.f32.mxu0 %v9925_v39  ;;  %6815 = vmatmul.mubr.f32.vlgmr.msra.gmra.mxu1 %v9569_v47  ;;  %v9702_v47 = vand.u32 4294901760, %v7794_v3  ;;  %v7915_v35 = vsub.f32 %v7791_v15, %v9714_v21 }
 0x3ab   :  { %6957 = vmatpush1.msra.mxu1 %v6956_v23  ;;  %7069 = vmatmul.mubr.f32.vlgmr.msra.gmra.mxu0 %v9628_v31  ;;  %v7870_v31 = vsub.f32 %v9710_v46, %v7869_v7  ;;  %v8353_v41 = vand.u32 4294901760, %v8352_v56 }
 0x3ac   :  { %7188 = vmatpush1.msra.mxu0 %v6954_v5  ;;  %7106 = vmatprep.subr.mxu1 %v9619_v27  ;;  %v7909_v14 = vsub.f32 %v7794_v3, %v9702_v47 }
 0x3ad   :  { %7351 = vmatprep.subr.mxu0 %v9662_v6  ;;  %6990 = vmatprep.mubr.f32.mxu1 %v9925_v39  ;;  %v7871_v30 = vand.u32 4294901760, %v7870_v31 }
 0x3ae   :  { %7221 = vmatprep.mubr.f32.mxu0 %v9925_v39  ;;  %6992 = vmatmul.mubr.f32.vlgmr.msra.gmra.mxu1 %v9614_v19  ;;  %v7910_v26 = vand.u32 4294901760, %v7909_v14 }
 0x3af   :  { %7108 = vmatpush1.msra.mxu1 %v9632_v37  ;;  %7223 = vmatmul.mubr.f32.vlgmr.msra.gmra.mxu0 %v9614_v19 }
 0x3b0   :  { %7353 = vmatpush1.msra.mxu0 %v9675_v25  ;;  %7260 = vmatprep.subr.mxu1 %v9619_v27  ;;  %v7438_v27 = vand.u32 4294901760, %v7437_v17  ;;  %v7911_v10 = vsub.f32 %v7909_v14, %v7910_v26 }
 0x3b1   :  { %7512 = vmatprep.subr.mxu0 %v7429_v55  ;;  %7141 = vmatprep.mubr.f32.mxu1 %v9925_v39 }
 0x3b2   :  { %7386 = vmatprep.mubr.f32.mxu0 %v9925_v39  ;;  %7145 = vmatmul.mubr.f32.vlgmr.msra.gmra.mxu1 %v6907_v24  ;;  %v8391_v24 = vsub.f32 %v8276_v22, %v9744_v20  ;;  %v7912_v36 = vand.u32 4294901760, %v7911_v10 }
 0x3b3   :  { %7262 = vmatpush1.msra.mxu1 %v9632_v37  ;;  %7392 = vmatmul.mubr.f32.vlgmr.msra.gmra.mxu0 %v7391_v63  ;;  %v7916_v37 = vand.u32 4294901760, %v7915_v35 }
 0x3b4   :  { %7515 = vmatpush1.msra.mxu0 %v7435_v34  ;;  %7433 = vmatprep.subr.mxu1 %v7432_v29  ;;  %v8392_v50 = vand.u32 4294901760, %v8391_v24 }
 0x3b5   :  { %7666 = vmatprep.subr.mxu0 %v7430_v48  ;;  %7295 = vmatprep.mubr.f32.mxu1 %v9925_v39  ;;  %v7917_v33 = vsub.f32 %v7915_v35, %v7916_v37 }
 0x3b6   :  { %7548 = vmatprep.mubr.f32.mxu0 %v9925_v39  ;;  %7297 = vmatmul.mubr.f32.vlgmr.msra.gmra.mxu1 %v9614_v19  ;;  %v8275_v19 = vsel %vm8989_vm7, %v8271_v51, 0.0  ;;  %v8393_v28 = vsub.f32 %v8391_v24, %v8392_v50 }
 0x3b7   :  { %7439 = vmatpush1.msra.mxu1 %v7438_v27  ;;  %7551 = vmatmul.mubr.f32.vlgmr.msra.gmra.mxu0 %v9671_v1  ;;  %v8314_v12 = vand.u32 4294901760, %v8275_v19  ;;  %v7918_v18 = vand.u32 4294901760, %v7917_v33 }
 0x3b8   :  { %7670 = vmatpush1.msra.mxu0 %v7436_v0  ;;  %7588 = vmatprep.subr.mxu1 %v9662_v6  ;;  %v8394_v5 = vand.u32 4294901760, %v8393_v28 }
 0x3b9   :  { %7831 = vmatprep.subr.mxu0 %v9702_v47  ;;  %7472 = vmatprep.mubr.f32.mxu1 %v9925_v39  ;;  %v8397_v43 = vsub.f32 %v8275_v19, %v8314_v12 }
 0x3ba   :  { %7703 = vmatprep.mubr.f32.mxu0 %v9925_v39  ;;  %7474 = vmatmul.mubr.f32.vlgmr.msra.gmra.mxu1 %v9657_v42 }
 0x3bb   :  { %7590 = vmatpush1.msra.mxu1 %v9675_v25  ;;  %7705 = vmatmul.mubr.f32.vlgmr.msra.gmra.mxu0 %v9657_v42  ;;  %v8398_v38 = vand.u32 4294901760, %v8397_v43 }
 0x3bc   :  { %7833 = vmatpush1.msra.mxu0 %v9714_v21  ;;  %7742 = vmatprep.subr.mxu1 %v9662_v6 }
 0x3bd   :  { %7992 = vmatprep.subr.mxu0 %v7909_v14  ;;  %7623 = vmatprep.mubr.f32.mxu1 %v9925_v39 }
 0x3be   :  { %7866 = vmatprep.mubr.f32.mxu0 %v9925_v39  ;;  %7627 = vmatmul.mubr.f32.vlgmr.msra.gmra.mxu1 %v7389_v40 }
 0x3bf   :  { %7744 = vmatpush1.msra.mxu1 %v9675_v25  ;;  %7872 = vmatmul.mubr.f32.vlgmr.msra.gmra.mxu0 %v7871_v30 }
 0x3c0   :  { %7995 = vmatpush1.msra.mxu0 %v7915_v35  ;;  %7913 = vmatprep.subr.mxu1 %v7912_v36 }
 0x3c1   :  { %8146 = vmatprep.subr.mxu0 %v7910_v26  ;;  %7777 = vmatprep.mubr.f32.mxu1 %v9925_v39 }
 0x3c2   :  { %8028 = vmatprep.mubr.f32.mxu0 %v9925_v39  ;;  %7779 = vmatmul.mubr.f32.vlgmr.msra.gmra.mxu1 %v9657_v42  ;;  %v8399_v42 = vsub.f32 %v8397_v43, %v8398_v38 }
 0x3c3   :  { %7919 = vmatpush1.msra.mxu1 %v7918_v18  ;;  %8031 = vmatmul.mubr.f32.vlgmr.msra.gmra.mxu0 %v9710_v46 }
 0x3c4   :  { %8150 = vmatpush1.msra.mxu0 %v7916_v37  ;;  %8068 = vmatprep.subr.mxu1 %v9702_v47  ;;  %v8400_v6 = vand.u32 4294901760, %v8399_v42 }
 0x3c5   :  { %8313 = vmatprep.subr.mxu0 %v9744_v20  ;;  %7952 = vmatprep.mubr.f32.mxu1 %v9925_v39 }
 0x3c6   :  { %8183 = vmatprep.mubr.f32.mxu0 %v9925_v39  ;;  %7954 = vmatmul.mubr.f32.vlgmr.msra.gmra.mxu1 %v9697_v59 }
 0x3c7   :  { %8070 = vmatpush1.msra.mxu1 %v9714_v21  ;;  %8185 = vmatmul.mubr.f32.vlgmr.msra.gmra.mxu0 %v9697_v59 }
 0x3c8   :  { %8315 = vmatpush1.msra.mxu0 %v8314_v12  ;;  %8222 = vmatprep.subr.mxu1 %v9702_v47 }
 0x3c9   :  { %8474 = vmatprep.subr.mxu0 %v8391_v24  ;;  %8103 = vmatprep.mubr.f32.mxu1 %v9925_v39 }
 0x3ca   :  { %8348 = vmatprep.mubr.f32.mxu0 %v9925_v39  ;;  %8107 = vmatmul.mubr.f32.vlgmr.msra.gmra.mxu1 %v7869_v7 }
 0x3cb   :  { %8224 = vmatpush1.msra.mxu1 %v9714_v21  ;;  %8354 = vmatmul.mubr.f32.vlgmr.msra.gmra.mxu0 %v8353_v41 }
 0x3cc   :  { %8477 = vmatpush1.msra.mxu0 %v8397_v43  ;;  %8395 = vmatprep.subr.mxu1 %v8394_v5 }
 0x3cd   :  { %8628 = vmatprep.subr.mxu0 %v8392_v50  ;;  %8257 = vmatprep.mubr.f32.mxu1 %v9925_v39 }
 0x3ce   :  { %8510 = vmatprep.mubr.f32.mxu0 %v9925_v39  ;;  %8259 = vmatmul.mubr.f32.vlgmr.msra.gmra.mxu1 %v9697_v59 }
 0x3cf   :  { %8401 = vmatpush1.msra.mxu1 %v8400_v6  ;;  %8513 = vmatmul.mubr.f32.vlgmr.msra.gmra.mxu0 %v9753_v16 }
 0x3d0   :  { %8632 = vmatpush1.msra.mxu0 %v8398_v38  ;;  %8550 = vmatprep.subr.mxu1 %v9744_v20 }
 0x3d1   :  { %8434 = vmatprep.mubr.f32.mxu1 %v9925_v39  ;;  %8665 = vmatprep.mubr.f32.mxu0 %v9925_v39 }
 0x3d2   :  { %8436 = vmatmul.mubr.f32.vlgmr.msra.gmra.mxu1 %v9739_v52 }
 0x3d3   :  { %8552 = vmatpush1.msra.mxu1 %v8314_v12  ;;  %8585 = vmatprep.mubr.f32.mxu1 %v9925_v39 }
 0x3d4   :  { %8704 = vmatprep.subr.mxu1 %v9744_v20  ;;  %8667 = vmatmul.mubr.f32.vlgmr.msra.gmra.mxu0 %v9739_v52 }
 0x3d6   :  { %8589 = vmatmul.mubr.f32.vlgmr.msra.gmra.mxu1 %v8351_v62 }
 0x3d7   :  { %8706 = vmatpush1.msra.mxu1 %v8314_v12  ;;  %8739 = vmatprep.mubr.f32.mxu1 %v9925_v39 }
 0x3da   :  { %8741 = vmatmul.mubr.f32.vlgmr.msra.gmra.mxu1 %v9739_v52 }
 0x42a   :  { %v4527_v2 = vpop.f32.mrf.mxu0 }
 0x42c   :  { %v4529_v9 = vpop.f32.mrf.mxu0 }
 0x42e   :  { %v4686_v32 = vpop.f32.mrf.mxu0 }
 0x430   :  { %v4688_v1 = vpop.f32.mrf.mxu0 }
 0x432   :  { %v4609_v25 = vpop.f32.mrf.mxu1 }
 0x433   :  { %v4610_v44 = vadd.f32 %v4609_v25, %v4527_v2  ;;  %v4840_v60 = vpop.f32.mrf.mxu0 }
 0x434   :  { %v4611_v55 = vpop.f32.mrf.mxu1 }
 0x435   :  { %v4612_v49 = vadd.f32 %v4611_v55, %v4529_v9  ;;  %v4687_v40 = vadd.f32 %v4686_v32, %v4610_v44  ;;  %v4842_v53 = vpop.f32.mrf.mxu0 }
 0x436   :  { %v4762_v61 = vpop.f32.mrf.mxu1 }
 0x437   :  { %v4689_v34 = vadd.f32 %v4688_v1, %v4612_v49  ;;  %v4763_v23 = vadd.f32 %v4762_v61, %v4687_v40  ;;  %v4995_v48 = vpop.f32.mrf.mxu0 }
 0x438   :  { %v4764_v3 = vpop.f32.mrf.mxu1 }
 0x439   :  { %v4765_v4 = vadd.f32 %v4764_v3, %v4689_v34  ;;  %v4841_v39 = vadd.f32 %v4840_v60, %v4763_v23  ;;  %v4997_v13 = vpop.f32.mrf.mxu0 }
 0x43a   :  { %v4914_v59 = vpop.f32.mrf.mxu1 }
 0x43b   :  { %v4843_v0 = vadd.f32 %v4842_v53, %v4765_v4  ;;  %v4915_v47 = vadd.f32 %v4914_v59, %v4841_v39  ;;  %v5154_v15 = vpop.f32.mrf.mxu0 }
 0x43c   :  { %v4916_v57 = vpop.f32.mrf.mxu1 }
 0x43d   :  { %v4917_v63 = vadd.f32 %v4916_v57, %v4843_v0  ;;  %v4996_v46 = vadd.f32 %v4995_v48, %v4915_v47  ;;  %v5156_v45 = vpop.f32.mrf.mxu0 }
 0x43e   :  { %v5077_v21 = vpop.f32.mrf.mxu1 }
 0x43f   :  { %v4998_v17 = vadd.f32 %v4997_v13, %v4917_v63  ;;  %v5078_v8 = vadd.f32 %v5077_v21, %v4996_v46  ;;  %v5308_v14 = vpop.f32.mrf.mxu0 }
 0x440   :  { %v5079_v29 = vpop.f32.mrf.mxu1 }
 0x441   :  { %v5080_v7 = vadd.f32 %v5079_v29, %v4998_v17  ;;  %v5155_v54 = vadd.f32 %v5154_v15, %v5078_v8  ;;  %v5310_v58 = vpop.f32.mrf.mxu0 }
 0x442   :  { %v5230_v11 = vpop.f32.mrf.mxu1 }
 0x443   :  { %v5157_v35 = vadd.f32 %v5156_v45, %v5080_v7  ;;  %v5231_v27 = vadd.f32 %v5230_v11, %v5155_v54  ;;  %v5475_v26 = vpop.f32.mrf.mxu0 }
 0x444   :  { %v5232_v22 = vpop.f32.mrf.mxu1 }
 0x445   :  { %v5233_v51 = vadd.f32 %v5232_v22, %v5157_v35  ;;  %v5309_v31 = vadd.f32 %v5308_v14, %v5231_v27  ;;  %v9795_v52 = vpop.f32.mrf.mxu0 }
 0x446   :  { %v5382_v37 = vpop.f32.mrf.mxu1 }
 0x447   :  { %v5311_v20 = vadd.f32 %v5310_v58, %v5233_v51  ;;  %v5383_v19 = vadd.f32 %v5382_v37, %v5309_v31  ;;  %v5634_v10 = vpop.f32.mrf.mxu0 }
 0x448   :  { %v5384_v30 = vpop.f32.mrf.mxu1 }
 0x449   :  { %v9797_v16 = vadd.f32 %v5384_v30, %v5311_v20  ;;  %v9799_v33 = vpop.f32.mrf.mxu0 }
 0x44a   :  { %v5557_v12 = vpop.f32.mrf.mxu1 }
 0x44b   :  { %v5558_v24 = vadd.f32 %v5557_v12, %v5475_v26  ;;  %v5788_v36 = vpop.f32.mrf.mxu0 }
 0x44c   :  { %v5559_v62 = vpop.f32.mrf.mxu1 }
 0x44d   :  { %v5635_v43 = vadd.f32 %v5634_v10, %v5558_v24  ;;  %v9801_v18 = vpop.f32.mrf.mxu0 }
 0x44e   :  { %v5710_v50 = vpop.f32.mrf.mxu1 }
 0x44f   :  { %v5711_v56 = vadd.f32 %v5710_v50, %v5635_v43  ;;  %v5957_v38 = vpop.f32.mrf.mxu0 }
 0x450   :  { %v9803_v28 = vpop.f32.mrf.mxu1 }
 0x451   :  { %v5789_v41 = vadd.f32 %v5788_v36, %v5711_v56  ;;  %v5959_v42 = vpop.f32.mrf.mxu0 }
 0x452   :  { %v5862_v5 = vpop.f32.mrf.mxu1 }
 0x453   :  { %v5863_v6 = vadd.f32 %v5862_v5, %v5789_v41  ;;  %v6116_v2 = vpop.f32.mrf.mxu0 }
 0x454   :  { %v9805_v9 = vpop.f32.mrf.mxu1 }
 0x455   :  { %v9807_v32 = vadd.f32 %v5863_v6, %v5383_v19  ;;  %v6118_v1 = vpop.f32.mrf.mxu0  ;;  %v5560_v19 = vadd.f32 %v5559_v62, %v9795_v52 }
 0x456   :  { %v6039_v25 = vpop.f32.mrf.mxu1 }
 0x457   :  { %9929 = vst [vmem:[#allocation7_spill] sm:$0xff] %v9807_v32  ;;  %v9809_v44 = vpop.f32.mrf.mxu0  ;;  %v6040_v12 = vadd.f32 %v6039_v25, %v5957_v38  ;;  %v5637_v50 = vadd.f32 %v9799_v33, %v5560_v19 }
 0x458   :  { %v6041_v60 = vpop.f32.mrf.mxu1 }
 0x459   :  { %v9811_v55 = vpop.f32.mrf.mxu0  ;;  %v6042_v24 = vadd.f32 %v6041_v60, %v5959_v42  ;;  %v5713_v62 = vadd.f32 %v9803_v28, %v5637_v50 }
 0x45a   :  { %v6192_v49 = vpop.f32.mrf.mxu1 }
 0x45b   :  { %v6429_v40 = vpop.f32.mrf.mxu0 }
 0x45c   :  { %v6194_v53 = vpop.f32.mrf.mxu1 }
 0x45d   :  { %v6431_v61 = vpop.f32.mrf.mxu0 }
 0x45e   :  { %v9813_v34 = vpop.f32.mrf.mxu1 }
 0x45f   :  { %v6588_v23 = vpop.f32.mrf.mxu0 }
 0x460   :  { %v9815_v48 = vpop.f32.mrf.mxu1 }
 0x461   :  { %v6590_v3 = vpop.f32.mrf.mxu0 }
 0x462   :  { %v6511_v4 = vpop.f32.mrf.mxu1 }
 0x463   :  { %v9817_v39 = vpop.f32.mrf.mxu0  ;;  %v6512_v56 = vadd.f32 %v6511_v4, %v6429_v40 }
 0x464   :  { %v6513_v13 = vpop.f32.mrf.mxu1 }
 0x465   :  { %v9819_v59 = vpop.f32.mrf.mxu0  ;;  %v6514_v41 = vadd.f32 %v6513_v13, %v6431_v61  ;;  %v6589_v38 = vadd.f32 %v6588_v23, %v6512_v56  ;;  %v9938_v56 = vld [vmem:[#allocation7_spill] sm:$0xff] }
 0x466   :  { %v6664_v0 = vpop.f32.mrf.mxu1 }
 0x467   :  { %v6911_v47 = vpop.f32.mrf.mxu0  ;;  %v6591_v42 = vadd.f32 %v6590_v3, %v6514_v41 }
 0x468   :  { %v6666_v15 = vpop.f32.mrf.mxu1 }
 0x469   :  { %v6913_v57 = vpop.f32.mrf.mxu0 }
 0x46a   :  { %v9821_v63 = vpop.f32.mrf.mxu1 }
 0x46b   :  { %v7070_v46 = vpop.f32.mrf.mxu0 }
 0x46c   :  { %v9823_v45 = vpop.f32.mrf.mxu1 }
 0x46d   :  { %9930 = vst [vmem:[#allocation10_spill] sm:$0xff] %v9823_v45  ;;  %v7072_v21 = vpop.f32.mrf.mxu0 }
 0x46e   :  { %v6993_v17 = vpop.f32.mrf.mxu1 }
 0x46f   :  { %v9825_v8 = vpop.f32.mrf.mxu0  ;;  %v6994_v32 = vadd.f32 %v6993_v17, %v6911_v47  ;;  %v6665_v17 = vadd.f32 %v6664_v0, %v6589_v38 }
 0x470   :  { %v6995_v14 = vpop.f32.mrf.mxu1 }
 0x471   :  { %v9827_v29 = vpop.f32.mrf.mxu0  ;;  %v7071_v4 = vadd.f32 %v7070_v46, %v6994_v32 }
 0x472   :  { %v7146_v7 = vpop.f32.mrf.mxu1 }
 0x473   :  { %v7393_v54 = vpop.f32.mrf.mxu0 }
 0x474   :  { %v7148_v58 = vpop.f32.mrf.mxu1 }
 0x475   :  { %v7395_v11 = vpop.f32.mrf.mxu0 }
 0x476   :  { %v9829_v35 = vpop.f32.mrf.mxu1 }
 0x477   :  { %9931 = vst [vmem:[#allocation11_spill] sm:$0xff] %v9829_v35  ;;  %v7552_v27 = vpop.f32.mrf.mxu0  ;;  %v6119_v35 = vadd.f32 %v6118_v1, %v6042_v24 }
 0x478   :  { %v9831_v26 = vpop.f32.mrf.mxu1 }
 0x479   :  { %9932 = vst [vmem:[#allocation6_spill] sm:$0xff] %v9831_v26  ;;  %v7554_v22 = vpop.f32.mrf.mxu0  ;;  %v6117_v26 = vadd.f32 %v6116_v2, %v6040_v12  ;;  %v6195_v61 = vadd.f32 %v6194_v53, %v6119_v35 }
 0x47a   :  { %v7475_v51 = vpop.f32.mrf.mxu1 }
 0x47b   :  { %v9833_v31 = vpop.f32.mrf.mxu0  ;;  %v7476_v60 = vadd.f32 %v7475_v51, %v7393_v54  ;;  %v6193_v40 = vadd.f32 %v6192_v49, %v6117_v26  ;;  %v7147_v49 = vadd.f32 %v7146_v7, %v7071_v4 }
 0x47c   :  { %9933 = vst [vmem:[#allocation8_spill] sm:$0xff] %v9833_v31  ;;  %v7477_v37 = vpop.f32.mrf.mxu1  ;;  %v6996_v31 = vadd.f32 %v6995_v14, %v6913_v57  ;;  %v5791_v57 = vadd.f32 %v9801_v18, %v5713_v62  ;;  %v6667_v14 = vadd.f32 %v6666_v15, %v6591_v42  ;;  %v6743_v18 = vadd.f32 %v9817_v39, %v6665_v17 }
 0x47d   :  { %v9835_v20 = vpop.f32.mrf.mxu0  ;;  %v7478_v45 = vadd.f32 %v7477_v37, %v7395_v11  ;;  %v7553_v28 = vadd.f32 %v7552_v27, %v7476_v60  ;;  %v6271_v54 = vadd.f32 %v9809_v44, %v6193_v40  ;;  %v6273_v11 = vadd.f32 %v9811_v55, %v6195_v61 }
 0x47e   :  { %9934 = vst [vmem:[#allocation9_spill] sm:$0xff] %v9835_v20  ;;  %v7628_v10 = vpop.f32.mrf.mxu1  ;;  %v7073_v13 = vadd.f32 %v7072_v21, %v6996_v31  ;;  %v5865_v26 = vadd.f32 %v9805_v9, %v5791_v57  ;;  %v6745_v0 = vadd.f32 %v9819_v59, %v6667_v14  ;;  %v7225_v7 = vadd.f32 %v9825_v8, %v7147_v49  ;;  %v9935_v59 = vld [vmem:[#allocation10_spill] sm:$0xff] }
 0x47f   :  { %v7873_v30 = vpop.f32.mrf.mxu0  ;;  %v7555_v23 = vadd.f32 %v7554_v22, %v7478_v45  ;;  %v7629_v27 = vadd.f32 %v7628_v10, %v7553_v28  ;;  %v6345_v44 = vadd.f32 %v9813_v34, %v6271_v54  ;;  %v6347_v55 = vadd.f32 %v9815_v48, %v6273_v11 }
 0x480   :  { %v7630_v36 = vpop.f32.mrf.mxu1  ;;  %v7149_v53 = vadd.f32 %v7148_v58, %v7073_v13  ;;  %v5868_v9 = vadd.f32 %v5865_v26, %v9797_v16  ;;  %v6817_v39 = vadd.f32 %v9821_v63, %v6743_v18  ;;  %v8765_v18 = vld [vmem:[%s9887_s5] sm:$0xff] }
 0x481   :  { %v7875_v43 = vpop.f32.mrf.mxu0  ;;  %v7631_v45 = vadd.f32 %v7630_v36, %v7555_v23  ;;  %v6349_v8 = vadd.f32 %v6345_v44, %v9938_v56 }
 0x482   :  { %v9839_v5 = vpop.f32.mrf.mxu1  ;;  %v7227_v58 = vadd.f32 %v9827_v29, %v7149_v53  ;;  %v6350_v41 = vadd.f32 %v6347_v55, %v5868_v9  ;;  %v9939_v29 = vld [vmem:[#allocation11_spill] sm:$0xff] }
 0x483   :  { %v8032_v6 = vpop.f32.mrf.mxu0  ;;  %v9936_v36 = vld [vmem:[#allocation8_spill] sm:$0xff]  ;;  %v6821_v60 = vadd.f32 %v6817_v39, %v6349_v8 }
 0x484   :  { %v9841_v20 = vpop.f32.mrf.mxu1 }
 0x485   :  { %v8034_v52 = vpop.f32.mrf.mxu0  ;;  %v9937_v34 = vld [vmem:[#allocation9_spill] sm:$0xff] }
 0x486   :  { %v7955_v25 = vpop.f32.mrf.mxu1  ;;  %v7709_v50 = vadd.f32 %v9937_v34, %v7631_v45  ;;  %v8827_v34 = vld [vmem:[%s9882_s0] sm:$0xff] }
 0x487   :  { %v8186_v33 = vpop.f32.mrf.mxu0  ;;  %v7956_v2 = vadd.f32 %v7955_v25, %v7873_v30  ;;  %v6819_v30 = vadd.f32 %v9935_v59, %v6745_v0 }
 0x488   :  { %v7957_v19 = vpop.f32.mrf.mxu1 }
 0x489   :  { %v7958_v1 = vadd.f32 %v7957_v19, %v7875_v43  ;;  %v8188_v47 = vpop.f32.mrf.mxu0  ;;  %v8033_v46 = vadd.f32 %v8032_v6, %v7956_v2  ;;  %v7707_v43 = vadd.f32 %v9936_v36, %v7629_v27  ;;  %v7299_v6 = vadd.f32 %v9939_v29, %v7225_v7  ;;  %v8773_v7 = vld [vmem:[%s9888_s6] sm:$0xff] }
 0x48a   :  { %v8108_v12 = vpop.f32.mrf.mxu1  ;;  %v6822_v40 = vadd.f32 %v6819_v30, %v6350_v41  ;;  %v7783_v19 = vadd.f32 %v9841_v20, %v7709_v50 }
 0x48b   :  { %v8355_v3 = vpop.f32.mrf.mxu0  ;;  %v8035_v21 = vadd.f32 %v8034_v52, %v7958_v1  ;;  %v8109_v31 = vadd.f32 %v8108_v12, %v8033_v46  ;;  %v9940_v52 = vld [vmem:[#allocation6_spill] sm:$0xff]  ;;  %v7781_v13 = vadd.f32 %v9839_v5, %v7707_v43  ;;  %v7303_v57 = vadd.f32 %v7299_v6, %v6821_v60 }
 0x48c   :  { %v8110_v32 = vpop.f32.mrf.mxu1  ;;  %v7301_v62 = vadd.f32 %v9940_v52, %v7227_v58 }
 0x48d   :  { %v8357_v35 = vpop.f32.mrf.mxu0  ;;  %v8111_v37 = vadd.f32 %v8110_v32, %v8035_v21  ;;  %v8187_v16 = vadd.f32 %v8186_v33, %v8109_v31  ;;  %v7785_v54 = vadd.f32 %v7781_v13, %v7303_v57 }
 0x48e   :  { %v8260_v15 = vpop.f32.mrf.mxu1  ;;  %v7304_v17 = vadd.f32 %v7301_v62, %v6822_v40 }
 0x48f   :  { %v8514_v22 = vpop.f32.mrf.mxu0  ;;  %v8189_v42 = vadd.f32 %v8188_v47, %v8111_v37  ;;  %v8261_v12 = vadd.f32 %v8260_v15, %v8187_v16 }
 0x490   :  { %v8262_v51 = vpop.f32.mrf.mxu1  ;;  %v7786_v11 = vadd.f32 %v7783_v19, %v7304_v17 }
 0x491   :  { %v8516_v24 = vpop.f32.mrf.mxu0  ;;  %v8263_v28 = vadd.f32 %v8262_v51, %v8189_v42  ;;  %v8265_v46 = vadd.f32 %v8261_v12, %v7785_v54 }
 0x492   :  { %v8437_v10 = vpop.f32.mrf.mxu1 }
 0x493   :  { %v8438_v48 = vadd.f32 %v8437_v10, %v8355_v3  ;;  %v8266_v5 = vadd.f32 %v8263_v28, %v7786_v11 }
 0x494   :  { %v8439_v38 = vpop.f32.mrf.mxu1  ;;  %v8668_v4 = vpop.f32.mrf.mxu0 }
 0x495   :  { %v8440_v63 = vadd.f32 %v8439_v38, %v8357_v35  ;;  %v8515_v25 = vadd.f32 %v8514_v22, %v8438_v48  ;;  %v8828_v48 = vld [vmem:[%s9882_s0 + $0x8] sm:$0xff] }
 0x496   :  { %v8590_v61 = vpop.f32.mrf.mxu1  ;;  %v8670_v47 = vpop.f32.mrf.mxu0 }
 0x497   :  { %v8517_v2 = vadd.f32 %v8516_v24, %v8440_v63  ;;  %v8591_v1 = vadd.f32 %v8590_v61, %v8515_v25 }
 0x498   :  { %v8592_v14 = vpop.f32.mrf.mxu1 }
 0x499   :  { %v8593_v23 = vadd.f32 %v8592_v14, %v8517_v2  ;;  %v8669_v33 = vadd.f32 %v8668_v4, %v8591_v1 }
 0x49a   :  { %v8742_v3 = vpop.f32.mrf.mxu1 }
 0x49b   :  { %v8671_v49 = vadd.f32 %v8670_v47, %v8593_v23  ;;  %v8743_v53 = vadd.f32 %v8742_v3, %v8669_v33 }
 0x49c   :  { %v8744_v32 = vpop.f32.mrf.mxu1 }
 0x49d   :  { %v8745_v21 = vadd.f32 %v8744_v32, %v8671_v49  ;;  %v8747_v20 = vadd.f32 %v8743_v53, %v8265_v46 }
 0x49f   :  { %v8748_v35 = vadd.f32 %v8745_v21, %v8266_v5 }
 0x4a1   :  { %v8749_v26 = vadd.f32 %v8748_v35, %v8747_v20 }
 0x4a3   :  { %8750 = vadd.xlane.f32.xlu0 %v8749_v26 }
 0x4b9   :  { %8768 = vperm.xlu0 %8821, %v8765_v18  }
 0x52c   :  { %v8751_v0 = vpop.xlane.xlu0 %8750 }
 0x52d   :  { %v8752_v15 = vmul.f32 0.00390625, %v8751_v0 }
 0x52f   :  { %v8753_v27 = vsub.f32 %v8747_v20, %v8752_v15  ;;  %v8754_v45 = vsub.f32 %v8748_v35, %v8752_v15 }
 0x531   :  { %v8755_v22 = vmul.f32 %v8753_v27, %v8753_v27  ;;  %v8756_v44 = vmul.f32 %v8754_v45, %v8754_v45 }
 0x533   :  { %v8757_v55 = vadd.f32 %v8756_v44, %v8755_v22 }
 0x534   :  { %v8769_v59 = vpop.permute.xlu0 %8768 }
 0x535   :  { %8758 = vadd.xlane.f32.xlu1 %v8757_v55 }
 0x546   :  { %8776 = vperm.xlu1 %8822, %v8773_v7  }
 0x5be   :  { %v8759_v58 = vpop.xlane.xlu1 %8758 }
 0x5bf   :  { %v8760_v51 = vmul.f32 0.00390625, %v8759_v58 }
 0x5c1   :  { %v8761_v31 = vadd.f32 1e-05, %v8760_v51 }
 0x5c2   :  { %v8777_v24 = vpop.permute.xlu1 %8776 }
 0x5c3   :  { %8825 = vrsqrt.f32 %v8761_v31 }
 0x5d0   :  { %v8826_v37 = vpop.eup %8825 }
 0x5d1   :  { %v8763_v9 = vmul.f32 %v8826_v37, %v8753_v27  ;;  %v8764_v39 = vmul.f32 %v8826_v37, %v8754_v45 }
 0x5d3   :  { %v8771_v30 = vmul.f32 %v8769_v59, %v8763_v9  ;;  %v8772_v10 = vmul.f32 %v8769_v59, %v8764_v39 }
 0x5d5   :  { %v8779_v36 = vadd.f32 %v8777_v24, %v8771_v30  ;;  %v8780_v43 = vadd.f32 %v8777_v24, %v8772_v10 }
 0x5d7   :  { %v8781_v50 = vadd.f32 %v8827_v34, %v8779_v36  ;;  %v8782_v56 = vadd.f32 %v8828_v48, %v8780_v43 }
 0x5d9   :  { %vm8783_vm15 = vcmp.gt.f32.partialorder %v8781_v50, 0.0  ;;  %vm8784_vm0 = vcmp.gt.f32.partialorder %v8782_v56, 0.0  ;;  %v8785_v8 = vmul.f32 0.01, %v8781_v50  ;;  %v8786_v41 = vmul.f32 0.01, %v8782_v56 }
 0x5db   :  { %v8787_v29 = vsel %vm8783_vm15, %v8781_v50, %v8785_v8  ;;  %v8788_v6 = vsel %vm8784_vm0, %v8782_v56, %v8786_v41 }
 0x5dc   :  { %8789 = vst [vmem:[%s9889_s7] sm:$0xff] %v8787_v29  ;;  %8790 = vst [vmem:[%s9889_s7 + $0x8] sm:$0xff] %v8788_v6 }

</bundles_post_ra>
